<compile_context>
chip_gen: v5e
topology: v5e:2x2
jax: 0.10.0
libtpu: 0.0.40
codegen_flags: <defaults>
</compile_context>

<pallas_src>
import functools

import jax
import jax.numpy as jnp
from jax.experimental import pallas as pl
from jax.experimental.pallas import tpu as pltpu

HEAD_PAD = 128   # lane-dense classifier head (real number of classes = 2)
SUBLANES = 8     # f32 sublane count -> minimum padded batch
LANES = 128      # lane count -> folded-table vocab padding


def gru_classifier_kernel(tok_ref, g_ref, bi_ref, whh_ref, bhn_ref,
                          wout_ref, bout_ref, o_ref, gi_scratch,
                          *, hidden_size, seq_len, batch, vocab_pad):
    """Fused (embedding + input-projection) matmul + GRU recurrence + ReLU + head.

    tok_ref:    (T*B, 1)   int32 token ids, time-major rows (VMEM)
    g_ref:      (Vp, 3H)   folded table  embeddings @ w_ih.T  (zero-padded rows)
    bi_ref:     (1, 3H)    pre-folded bias: [b_ir+b_hr, b_iz+b_hz, b_in]
    whh_ref:    (H, 3H)    hidden-to-hidden weights (gate order r, z, n)
    bhn_ref:    (1, H)     b_hn (must stay inside r * (...))
    wout_ref:   (H, 128)   classifier weights, zero-padded past column 1
    bout_ref:   (1, 128)   classifier bias, zero-padded
    o_ref:      (B, 128)   padded logits (cols 0..1 are real)
    gi_scratch: (T*B, 3H)  VMEM scratch for the hoisted input projection
    """
    H = hidden_size
    T = seq_len
    B = batch
    Vp = vocab_pad

    # ---- embedding lookup + input projection as ONE MXU matmul.
    ids = tok_ref[...]                                             # (T*B, 1) int32
    iota = jax.lax.broadcasted_iota(jnp.int32, (T * B, Vp), 1)
    onehot = (iota == ids).astype(jnp.float32)                     # (T*B, Vp)
    gi_scratch[...] = (jnp.dot(onehot, g_ref[...],
                               preferred_element_type=jnp.float32)
                       + bi_ref[...])                              # (T*B, 3H)

    whh = whh_ref[...]                                             # (H, 3H)
    b_hn = bhn_ref[...]                                            # (1, H)

    # ---- GRU recurrence, statically unrolled (T is small & static).
    # TODO(synk): for larger T switch to lax.fori_loop(..., unroll=True) with
    # pl.multiple_of on the pl.ds start, and optionally hold whh in the MXU
    # across steps via pltpu.matmul_push_rhs / matmul_acc_lhs / matmul_pop.
    h = jnp.zeros((B, H), dtype=jnp.float32)
    for t in range(T):
        gi = gi_scratch[pl.ds(t * B, B), :]                        # static, 8-aligned
        gh = jnp.dot(h, whh, preferred_element_type=jnp.float32)   # (B, 3H)
        rz = jax.nn.sigmoid(gi[:, :2 * H] + gh[:, :2 * H])         # r, z in one pass
        r = rz[:, :H]
        z = rz[:, H:]
        n = jnp.tanh(gi[:, 2 * H:] + r * (gh[:, 2 * H:] + b_hn))
        h = n + z * (h - n)                                        # (1-z)*n + z*h

    # ---- torch.relu(h_s[-1]); Dropout(0.5) is identity in eval mode.
    act = jnp.maximum(h, 0.0)
    o_ref[...] = (jnp.dot(act, wout_ref[...],
                          preferred_element_type=jnp.float32)
                  + bout_ref[...]).astype(o_ref.dtype)


def experimental_text_classifier(token_ids, params):
    """token_ids: (B, T) int32; params: dict of weights. Returns (B, 2) logits."""
    B, T = token_ids.shape
    H = params["hidden_size"]
    g_table = params["g_table_pad"]
    V_pad, threeH = g_table.shape

    # Pad batch to the f32 sublane count (padded rows use token 0; discarded).
    B_pad = max(SUBLANES, -(-B // SUBLANES) * SUBLANES)
    tok = jnp.zeros((B_pad, T), dtype=jnp.int32).at[:B, :].set(
        token_ids.astype(jnp.int32))
    # Time-major flatten: row t*B_pad + b holds the token of (b, t).
    tok_tm = tok.T.reshape(T * B_pad, 1)

    kernel = functools.partial(gru_classifier_kernel, hidden_size=H,
                               seq_len=T, batch=B_pad, vocab_pad=V_pad)
    vmem = pl.BlockSpec(memory_space=pltpu.MemorySpace.VMEM)

    operands = (tok_tm, g_table,
                params["bias_i_folded"], params["w_hh_t"], params["b_hn"],
                params["w_out_pad"], params["b_out_pad"])

    in_bytes = sum(int(x.nbytes) for x in operands)
    scratch_bytes = T * B_pad * threeH * 4
    out_bytes = B_pad * HEAD_PAD * 4
    # Explicit VMEM contract (everything resident once, no grid) + headroom.
    vmem_limit = int(2 * (in_bytes + scratch_bytes + out_bytes)) + (4 << 20)

    cost = pl.CostEstimate(
        flops=(2 * T * B_pad * V_pad * threeH        # one-hot folded projection
               + 2 * T * B_pad * H * threeH          # recurrence
               + 2 * B_pad * H * HEAD_PAD),          # classifier head
        transcendentals=T * B_pad * threeH,          # sigmoid(2H)+tanh(H) per step
        bytes_accessed=in_bytes + out_bytes)

    out = pl.pallas_call(
        kernel,
        out_shape=jax.ShapeDtypeStruct((B_pad, HEAD_PAD), jnp.float32),
        in_specs=[vmem] * len(operands),
        out_specs=vmem,
        scratch_shapes=[pltpu.VMEM((T * B_pad, threeH), jnp.float32)],
        compiler_params=pltpu.CompilerParams(vmem_limit_bytes=vmem_limit),
        cost_estimate=cost,
    )(*operands)

    # TODO(synk): production vocab -> keep the table in HBM (memory_space=pl.ANY)
    # and DMA-gather only the needed rows instead of the folded one-hot table;
    # large B/T -> add a batch/timestep grid (dimension_semantics=("parallel",...)
    # for v7x's 2 TCs) with tiles re-derived against 64 MiB v7x VMEM and bf16
    # MXU weights on v6e/v7x (keep f32 accumulation and gate math).
    return out[:B, :2]


def init_params(key, vocab=64, embed_dim=32, hidden_size=128):
    """Deterministic synthetic parameters matching the torch module's shapes."""
    H = hidden_size
    ks = jax.random.split(key, 7)
    embeddings = jax.random.normal(ks[0], (vocab, embed_dim), jnp.float32)
    # torch.nn.GRU: weight_ih_l0 (3H, E), weight_hh_l0 (3H, H), biases (3H,)
    w_ih = 0.1 * jax.random.normal(ks[1], (3 * H, embed_dim), jnp.float32)
    w_hh = 0.1 * jax.random.normal(ks[2], (3 * H, H), jnp.float32)
    b_ih = 0.1 * jax.random.normal(ks[3], (3 * H,), jnp.float32)
    b_hh = 0.1 * jax.random.normal(ks[4], (3 * H,), jnp.float32)
    # torch.nn.Linear(hidden_size, 2): weight (2, H), bias (2,)
    w_out = 0.1 * jax.random.normal(ks[5], (2, H), jnp.float32)
    b_out = 0.1 * jax.random.normal(ks[6], (2,), jnp.float32)

    # ---- kernel-side layouts -------------------------------------------------
    # Fold the frozen embedding table into the input projection:
    #   G[v, :] = embeddings[v, :] @ w_ih.T        (V, 3H)
    # so the in-kernel lookup + projection collapses to one one-hot MXU matmul.
    # Vocab rows are zero-padded to a lane-dense multiple of 128.
    g_table = jnp.dot(embeddings, w_ih.T)                       # (V, 3H)
    v_pad = max(LANES, -(-vocab // LANES) * LANES)
    g_table_pad = jnp.zeros((v_pad, 3 * H), jnp.float32).at[:vocab, :].set(g_table)

    bias_i_folded = jnp.concatenate(
        [b_ih[:2 * H] + b_hh[:2 * H], b_ih[2 * H:]]).reshape(1, 3 * H)
    b_hn = b_hh[2 * H:].reshape(1, H)
    w_out_pad = jnp.zeros((H, HEAD_PAD), jnp.float32).at[:, :2].set(w_out.T)
    b_out_pad = jnp.zeros((1, HEAD_PAD), jnp.float32).at[0, :2].set(b_out)

    return {
        # torch-equivalent originals (used by the pure-JAX reference)
        "embeddings": embeddings,
        "w_ih": w_ih, "w_hh": w_hh, "b_ih": b_ih, "b_hh": b_hh,
        "w_out": w_out, "b_out": b_out,
        # kernel-side layouts
        "g_table_pad": g_table_pad,          # (Vp, 3H) folded embedding+proj table
        "w_hh_t": jnp.asarray(w_hh.T),       # (H, 3H)
        "bias_i_folded": bias_i_folded,      # (1, 3H)
        "b_hn": b_hn,                        # (1, H)
        "w_out_pad": w_out_pad,              # (H, 128)
        "b_out_pad": b_out_pad,              # (1, 128)
        "hidden_size": H,
    }


def reference_forward(token_ids, params):
    """Pure-JAX reference of the torch forward (eval mode) for sanity checking."""
    H = params["hidden_size"]
    x = jnp.take(params["embeddings"], token_ids, axis=0)   # (B, T, E)
    B, T, _ = x.shape
    h = jnp.zeros((B, H), jnp.float32)
    w_ih_t = params["w_ih"].T
    w_hh_t = params["w_hh"].T
    b_ih = params["b_ih"][None, :]
    b_hh = params["b_hh"][None, :]
    for t in range(T):
        gi = x[:, t, :] @ w_ih_t + b_ih
        gh = h @ w_hh_t + b_hh
        r = jax.nn.sigmoid(gi[:, :H] + gh[:, :H])
        z = jax.nn.sigmoid(gi[:, H:2 * H] + gh[:, H:2 * H])
        n = jnp.tanh(gi[:, 2 * H:] + r * gh[:, 2 * H:])
        h = (1.0 - z) * n + z * h
    act = jnp.maximum(h, 0.0)
    return act @ params["w_out"].T + params["b_out"][None, :]


if __name__ == "__main__":
    key = jax.random.PRNGKey(0)
    pkey, ikey = jax.random.split(key)

    B, T = 2, 8
    VOCAB, E, H = 64, 32, 128

    params = init_params(pkey, vocab=VOCAB, embed_dim=E, hidden_size=H)
    token_ids = jax.random.randint(ikey, (B, T), 0, VOCAB, dtype=jnp.int32)

    logits = experimental_text_classifier(token_ids, params)
    logits = jax.block_until_ready(logits)

    ref = reference_forward(token_ids, params)
    assert logits.shape == (B, 2)
    assert jnp.allclose(logits, ref, atol=5e-4, rtol=5e-4), (logits, ref)

    print("KERNEL_OK")
</pallas_src>

<mosaic_0001>
module attributes {stable_mosaic.version = 11 : i64} {
  func.func @gru_classifier_kernel(%arg0: memref<64x1xi32, #tpu.memory_space<vmem>>, %arg1: memref<128x384xf32, #tpu.memory_space<vmem>>, %arg2: memref<1x384xf32, #tpu.memory_space<vmem>>, %arg3: memref<128x384xf32, #tpu.memory_space<vmem>>, %arg4: memref<1x128xf32, #tpu.memory_space<vmem>>, %arg5: memref<128x128xf32, #tpu.memory_space<vmem>>, %arg6: memref<1x128xf32, #tpu.memory_space<vmem>>, %arg7: memref<8x128xf32, #tpu.memory_space<vmem>>, %arg8: memref<64x384xf32, #tpu.memory_space<vmem>>) attributes {dimension_semantics = [], scalar_prefetch = 0 : i64, scratch_operands = 1 : i64, tpu.core_type = #tpu.core_type<tc>} {
    %c0 = arith.constant 0 : index
    %c0_0 = arith.constant 0 : index
    %0 = vector.load %arg0[%c0, %c0_0] : memref<64x1xi32, #tpu.memory_space<vmem>>, vector<64x1xi32>
    %1 = tpu.iota {dimensions = array<i32: 1>} : vector<64x128xi32>
    %2 = vector.broadcast %0 : vector<64x1xi32> to vector<64x128xi32>
    %3 = arith.cmpi eq, %1, %2 : vector<64x128xi32>
    %4 = arith.extui %3 : vector<64x128xi1> to vector<64x128xi32>
    %5 = arith.sitofp %4 : vector<64x128xi32> to vector<64x128xf32>
    %c0_1 = arith.constant 0 : index
    %c0_2 = arith.constant 0 : index
    %6 = vector.load %arg1[%c0_1, %c0_2] : memref<128x384xf32, #tpu.memory_space<vmem>>, vector<128x384xf32>
    %cst = arith.constant dense<0.000000e+00> : vector<64x384xf32>
    %7 = tpu.matmul %5, %6, %cst {dimension_numbers = #tpu.dot_dimension_numbers<[1], [0], [0], [1], [0, 0, 1, 1], [], []>} : vector<64x128xf32>, vector<128x384xf32>, vector<64x384xf32> -> vector<64x384xf32>
    %c0_3 = arith.constant 0 : index
    %c0_4 = arith.constant 0 : index
    %8 = vector.load %arg2[%c0_3, %c0_4] : memref<1x384xf32, #tpu.memory_space<vmem>>, vector<1x384xf32>
    %9 = vector.broadcast %8 : vector<1x384xf32> to vector<64x384xf32>
    %10 = arith.addf %7, %9 : vector<64x384xf32>
    %c0_5 = arith.constant 0 : index
    %c0_6 = arith.constant 0 : index
    %11 = vector.load %arg8[%c0_5, %c0_6] : memref<64x384xf32, #tpu.memory_space<vmem>>, vector<64x384xf32>
    tpu.vector_store %arg8[%c0_5, %c0_6], %10 {strides = array<i32>} : memref<64x384xf32, #tpu.memory_space<vmem>>, vector<64x384xf32>,
    %c0_7 = arith.constant 0 : index
    %c0_8 = arith.constant 0 : index
    %12 = vector.load %arg3[%c0_7, %c0_8] : memref<128x384xf32, #tpu.memory_space<vmem>>, vector<128x384xf32>
    %c0_9 = arith.constant 0 : index
    %c0_10 = arith.constant 0 : index
    %13 = vector.load %arg4[%c0_9, %c0_10] : memref<1x128xf32, #tpu.memory_space<vmem>>, vector<1x128xf32>
    %cst_11 = arith.constant 0.000000e+00 : f32
    %14 = vector.broadcast %cst_11 : f32 to vector<8x128xf32>
    %c0_12 = arith.constant 0 : index
    %c0_13 = arith.constant 0 : index
    %15 = vector.load %arg8[%c0_12, %c0_13] : memref<64x384xf32, #tpu.memory_space<vmem>>, vector<8x384xf32>
    %cst_14 = arith.constant dense<0.000000e+00> : vector<8x384xf32>
    %16 = tpu.matmul %14, %12, %cst_14 {dimension_numbers = #tpu.dot_dimension_numbers<[1], [0], [0], [1], [0, 0, 1, 1], [], []>} : vector<8x128xf32>, vector<128x384xf32>, vector<8x384xf32> -> vector<8x384xf32>
    %17 = vector.extract_strided_slice %15 {offsets = [0, 0], sizes = [8, 256], strides = [1, 1]} : vector<8x384xf32> to vector<8x256xf32>
    %18 = vector.extract_strided_slice %16 {offsets = [0, 0], sizes = [8, 256], strides = [1, 1]} : vector<8x384xf32> to vector<8x256xf32>
    %19 = arith.addf %17, %18 : vector<8x256xf32>
    %20 = arith.negf %19 : vector<8x256xf32>
    %21 = math.exp %20 : vector<8x256xf32>
    %cst_15 = arith.constant 1.000000e+00 : f32
    %22 = vector.broadcast %cst_15 : f32 to vector<8x256xf32>
    %23 = arith.addf %22, %21 : vector<8x256xf32>
    %24 = arith.divf %22, %23 : vector<8x256xf32>
    %25 = vector.extract_strided_slice %24 {offsets = [0, 0], sizes = [8, 128], strides = [1, 1]} : vector<8x256xf32> to vector<8x128xf32>
    %26 = vector.extract_strided_slice %24 {offsets = [0, 128], sizes = [8, 128], strides = [1, 1]} : vector<8x256xf32> to vector<8x128xf32>
    %27 = vector.extract_strided_slice %15 {offsets = [0, 256], sizes = [8, 128], strides = [1, 1]} : vector<8x384xf32> to vector<8x128xf32>
    %28 = vector.extract_strided_slice %16 {offsets = [0, 256], sizes = [8, 128], strides = [1, 1]} : vector<8x384xf32> to vector<8x128xf32>
    %29 = vector.broadcast %13 : vector<1x128xf32> to vector<8x128xf32>
    %30 = arith.addf %28, %29 : vector<8x128xf32>
    %31 = arith.mulf %25, %30 : vector<8x128xf32>
    %32 = arith.addf %27, %31 : vector<8x128xf32>
    %33 = math.tanh %32 : vector<8x128xf32>
    %34 = arith.subf %14, %33 : vector<8x128xf32>
    %35 = arith.mulf %26, %34 : vector<8x128xf32>
    %36 = arith.addf %33, %35 : vector<8x128xf32>
    %c8 = arith.constant 8 : index
    %c0_16 = arith.constant 0 : index
    %37 = vector.load %arg8[%c8, %c0_16] : memref<64x384xf32, #tpu.memory_space<vmem>>, vector<8x384xf32>
    %cst_17 = arith.constant dense<0.000000e+00> : vector<8x384xf32>
    %38 = tpu.matmul %36, %12, %cst_17 {dimension_numbers = #tpu.dot_dimension_numbers<[1], [0], [0], [1], [0, 0, 1, 1], [], []>} : vector<8x128xf32>, vector<128x384xf32>, vector<8x384xf32> -> vector<8x384xf32>
    %39 = vector.extract_strided_slice %37 {offsets = [0, 0], sizes = [8, 256], strides = [1, 1]} : vector<8x384xf32> to vector<8x256xf32>
    %40 = vector.extract_strided_slice %38 {offsets = [0, 0], sizes = [8, 256], strides = [1, 1]} : vector<8x384xf32> to vector<8x256xf32>
    %41 = arith.addf %39, %40 : vector<8x256xf32>
    %42 = arith.negf %41 : vector<8x256xf32>
    %43 = math.exp %42 : vector<8x256xf32>
    %cst_18 = arith.constant 1.000000e+00 : f32
    %44 = vector.broadcast %cst_18 : f32 to vector<8x256xf32>
    %45 = arith.addf %44, %43 : vector<8x256xf32>
    %46 = arith.divf %44, %45 : vector<8x256xf32>
    %47 = vector.extract_strided_slice %46 {offsets = [0, 0], sizes = [8, 128], strides = [1, 1]} : vector<8x256xf32> to vector<8x128xf32>
    %48 = vector.extract_strided_slice %46 {offsets = [0, 128], sizes = [8, 128], strides = [1, 1]} : vector<8x256xf32> to vector<8x128xf32>
    %49 = vector.extract_strided_slice %37 {offsets = [0, 256], sizes = [8, 128], strides = [1, 1]} : vector<8x384xf32> to vector<8x128xf32>
    %50 = vector.extract_strided_slice %38 {offsets = [0, 256], sizes = [8, 128], strides = [1, 1]} : vector<8x384xf32> to vector<8x128xf32>
    %51 = vector.broadcast %13 : vector<1x128xf32> to vector<8x128xf32>
    %52 = arith.addf %50, %51 : vector<8x128xf32>
    %53 = arith.mulf %47, %52 : vector<8x128xf32>
    %54 = arith.addf %49, %53 : vector<8x128xf32>
    %55 = math.tanh %54 : vector<8x128xf32>
    %56 = arith.subf %36, %55 : vector<8x128xf32>
    %57 = arith.mulf %48, %56 : vector<8x128xf32>
    %58 = arith.addf %55, %57 : vector<8x128xf32>
    %c16 = arith.constant 16 : index
    %c0_19 = arith.constant 0 : index
    %59 = vector.load %arg8[%c16, %c0_19] : memref<64x384xf32, #tpu.memory_space<vmem>>, vector<8x384xf32>
    %cst_20 = arith.constant dense<0.000000e+00> : vector<8x384xf32>
    %60 = tpu.matmul %58, %12, %cst_20 {dimension_numbers = #tpu.dot_dimension_numbers<[1], [0], [0], [1], [0, 0, 1, 1], [], []>} : vector<8x128xf32>, vector<128x384xf32>, vector<8x384xf32> -> vector<8x384xf32>
    %61 = vector.extract_strided_slice %59 {offsets = [0, 0], sizes = [8, 256], strides = [1, 1]} : vector<8x384xf32> to vector<8x256xf32>
    %62 = vector.extract_strided_slice %60 {offsets = [0, 0], sizes = [8, 256], strides = [1, 1]} : vector<8x384xf32> to vector<8x256xf32>
    %63 = arith.addf %61, %62 : vector<8x256xf32>
    %64 = arith.negf %63 : vector<8x256xf32>
    %65 = math.exp %64 : vector<8x256xf32>
    %cst_21 = arith.constant 1.000000e+00 : f32
    %66 = vector.broadcast %cst_21 : f32 to vector<8x256xf32>
    %67 = arith.addf %66, %65 : vector<8x256xf32>
    %68 = arith.divf %66, %67 : vector<8x256xf32>
    %69 = vector.extract_strided_slice %68 {offsets = [0, 0], sizes = [8, 128], strides = [1, 1]} : vector<8x256xf32> to vector<8x128xf32>
    %70 = vector.extract_strided_slice %68 {offsets = [0, 128], sizes = [8, 128], strides = [1, 1]} : vector<8x256xf32> to vector<8x128xf32>
    %71 = vector.extract_strided_slice %59 {offsets = [0, 256], sizes = [8, 128], strides = [1, 1]} : vector<8x384xf32> to vector<8x128xf32>
    %72 = vector.extract_strided_slice %60 {offsets = [0, 256], sizes = [8, 128], strides = [1, 1]} : vector<8x384xf32> to vector<8x128xf32>
    %73 = vector.broadcast %13 : vector<1x128xf32> to vector<8x128xf32>
    %74 = arith.addf %72, %73 : vector<8x128xf32>
    %75 = arith.mulf %69, %74 : vector<8x128xf32>
    %76 = arith.addf %71, %75 : vector<8x128xf32>
    %77 = math.tanh %76 : vector<8x128xf32>
    %78 = arith.subf %58, %77 : vector<8x128xf32>
    %79 = arith.mulf %70, %78 : vector<8x128xf32>
    %80 = arith.addf %77, %79 : vector<8x128xf32>
    %c24 = arith.constant 24 : index
    %c0_22 = arith.constant 0 : index
    %81 = vector.load %arg8[%c24, %c0_22] : memref<64x384xf32, #tpu.memory_space<vmem>>, vector<8x384xf32>
    %cst_23 = arith.constant dense<0.000000e+00> : vector<8x384xf32>
    %82 = tpu.matmul %80, %12, %cst_23 {dimension_numbers = #tpu.dot_dimension_numbers<[1], [0], [0], [1], [0, 0, 1, 1], [], []>} : vector<8x128xf32>, vector<128x384xf32>, vector<8x384xf32> -> vector<8x384xf32>
    %83 = vector.extract_strided_slice %81 {offsets = [0, 0], sizes = [8, 256], strides = [1, 1]} : vector<8x384xf32> to vector<8x256xf32>
    %84 = vector.extract_strided_slice %82 {offsets = [0, 0], sizes = [8, 256], strides = [1, 1]} : vector<8x384xf32> to vector<8x256xf32>
    %85 = arith.addf %83, %84 : vector<8x256xf32>
    %86 = arith.negf %85 : vector<8x256xf32>
    %87 = math.exp %86 : vector<8x256xf32>
    %cst_24 = arith.constant 1.000000e+00 : f32
    %88 = vector.broadcast %cst_24 : f32 to vector<8x256xf32>
    %89 = arith.addf %88, %87 : vector<8x256xf32>
    %90 = arith.divf %88, %89 : vector<8x256xf32>
    %91 = vector.extract_strided_slice %90 {offsets = [0, 0], sizes = [8, 128], strides = [1, 1]} : vector<8x256xf32> to vector<8x128xf32>
    %92 = vector.extract_strided_slice %90 {offsets = [0, 128], sizes = [8, 128], strides = [1, 1]} : vector<8x256xf32> to vector<8x128xf32>
    %93 = vector.extract_strided_slice %81 {offsets = [0, 256], sizes = [8, 128], strides = [1, 1]} : vector<8x384xf32> to vector<8x128xf32>
    %94 = vector.extract_strided_slice %82 {offsets = [0, 256], sizes = [8, 128], strides = [1, 1]} : vector<8x384xf32> to vector<8x128xf32>
    %95 = vector.broadcast %13 : vector<1x128xf32> to vector<8x128xf32>
    %96 = arith.addf %94, %95 : vector<8x128xf32>
    %97 = arith.mulf %91, %96 : vector<8x128xf32>
    %98 = arith.addf %93, %97 : vector<8x128xf32>
    %99 = math.tanh %98 : vector<8x128xf32>
    %100 = arith.subf %80, %99 : vector<8x128xf32>
    %101 = arith.mulf %92, %100 : vector<8x128xf32>
    %102 = arith.addf %99, %101 : vector<8x128xf32>
    %c32 = arith.constant 32 : index
    %c0_25 = arith.constant 0 : index
    %103 = vector.load %arg8[%c32, %c0_25] : memref<64x384xf32, #tpu.memory_space<vmem>>, vector<8x384xf32>
    %cst_26 = arith.constant dense<0.000000e+00> : vector<8x384xf32>
    %104 = tpu.matmul %102, %12, %cst_26 {dimension_numbers = #tpu.dot_dimension_numbers<[1], [0], [0], [1], [0, 0, 1, 1], [], []>} : vector<8x128xf32>, vector<128x384xf32>, vector<8x384xf32> -> vector<8x384xf32>
    %105 = vector.extract_strided_slice %103 {offsets = [0, 0], sizes = [8, 256], strides = [1, 1]} : vector<8x384xf32> to vector<8x256xf32>
    %106 = vector.extract_strided_slice %104 {offsets = [0, 0], sizes = [8, 256], strides = [1, 1]} : vector<8x384xf32> to vector<8x256xf32>
    %107 = arith.addf %105, %106 : vector<8x256xf32>
    %108 = arith.negf %107 : vector<8x256xf32>
    %109 = math.exp %108 : vector<8x256xf32>
    %cst_27 = arith.constant 1.000000e+00 : f32
    %110 = vector.broadcast %cst_27 : f32 to vector<8x256xf32>
    %111 = arith.addf %110, %109 : vector<8x256xf32>
    %112 = arith.divf %110, %111 : vector<8x256xf32>
    %113 = vector.extract_strided_slice %112 {offsets = [0, 0], sizes = [8, 128], strides = [1, 1]} : vector<8x256xf32> to vector<8x128xf32>
    %114 = vector.extract_strided_slice %112 {offsets = [0, 128], sizes = [8, 128], strides = [1, 1]} : vector<8x256xf32> to vector<8x128xf32>
    %115 = vector.extract_strided_slice %103 {offsets = [0, 256], sizes = [8, 128], strides = [1, 1]} : vector<8x384xf32> to vector<8x128xf32>
    %116 = vector.extract_strided_slice %104 {offsets = [0, 256], sizes = [8, 128], strides = [1, 1]} : vector<8x384xf32> to vector<8x128xf32>
    %117 = vector.broadcast %13 : vector<1x128xf32> to vector<8x128xf32>
    %118 = arith.addf %116, %117 : vector<8x128xf32>
    %119 = arith.mulf %113, %118 : vector<8x128xf32>
    %120 = arith.addf %115, %119 : vector<8x128xf32>
    %121 = math.tanh %120 : vector<8x128xf32>
    %122 = arith.subf %102, %121 : vector<8x128xf32>
    %123 = arith.mulf %114, %122 : vector<8x128xf32>
    %124 = arith.addf %121, %123 : vector<8x128xf32>
    %c40 = arith.constant 40 : index
    %c0_28 = arith.constant 0 : index
    %125 = vector.load %arg8[%c40, %c0_28] : memref<64x384xf32, #tpu.memory_space<vmem>>, vector<8x384xf32>
    %cst_29 = arith.constant dense<0.000000e+00> : vector<8x384xf32>
    %126 = tpu.matmul %124, %12, %cst_29 {dimension_numbers = #tpu.dot_dimension_numbers<[1], [0], [0], [1], [0, 0, 1, 1], [], []>} : vector<8x128xf32>, vector<128x384xf32>, vector<8x384xf32> -> vector<8x384xf32>
    %127 = vector.extract_strided_slice %125 {offsets = [0, 0], sizes = [8, 256], strides = [1, 1]} : vector<8x384xf32> to vector<8x256xf32>
    %128 = vector.extract_strided_slice %126 {offsets = [0, 0], sizes = [8, 256], strides = [1, 1]} : vector<8x384xf32> to vector<8x256xf32>
    %129 = arith.addf %127, %128 : vector<8x256xf32>
    %130 = arith.negf %129 : vector<8x256xf32>
    %131 = math.exp %130 : vector<8x256xf32>
    %cst_30 = arith.constant 1.000000e+00 : f32
    %132 = vector.broadcast %cst_30 : f32 to vector<8x256xf32>
    %133 = arith.addf %132, %131 : vector<8x256xf32>
    %134 = arith.divf %132, %133 : vector<8x256xf32>
    %135 = vector.extract_strided_slice %134 {offsets = [0, 0], sizes = [8, 128], strides = [1, 1]} : vector<8x256xf32> to vector<8x128xf32>
    %136 = vector.extract_strided_slice %134 {offsets = [0, 128], sizes = [8, 128], strides = [1, 1]} : vector<8x256xf32> to vector<8x128xf32>
    %137 = vector.extract_strided_slice %125 {offsets = [0, 256], sizes = [8, 128], strides = [1, 1]} : vector<8x384xf32> to vector<8x128xf32>
    %138 = vector.extract_strided_slice %126 {offsets = [0, 256], sizes = [8, 128], strides = [1, 1]} : vector<8x384xf32> to vector<8x128xf32>
    %139 = vector.broadcast %13 : vector<1x128xf32> to vector<8x128xf32>
    %140 = arith.addf %138, %139 : vector<8x128xf32>
    %141 = arith.mulf %135, %140 : vector<8x128xf32>
    %142 = arith.addf %137, %141 : vector<8x128xf32>
    %143 = math.tanh %142 : vector<8x128xf32>
    %144 = arith.subf %124, %143 : vector<8x128xf32>
    %145 = arith.mulf %136, %144 : vector<8x128xf32>
    %146 = arith.addf %143, %145 : vector<8x128xf32>
    %c48 = arith.constant 48 : index
    %c0_31 = arith.constant 0 : index
    %147 = vector.load %arg8[%c48, %c0_31] : memref<64x384xf32, #tpu.memory_space<vmem>>, vector<8x384xf32>
    %cst_32 = arith.constant dense<0.000000e+00> : vector<8x384xf32>
    %148 = tpu.matmul %146, %12, %cst_32 {dimension_numbers = #tpu.dot_dimension_numbers<[1], [0], [0], [1], [0, 0, 1, 1], [], []>} : vector<8x128xf32>, vector<128x384xf32>, vector<8x384xf32> -> vector<8x384xf32>
    %149 = vector.extract_strided_slice %147 {offsets = [0, 0], sizes = [8, 256], strides = [1, 1]} : vector<8x384xf32> to vector<8x256xf32>
    %150 = vector.extract_strided_slice %148 {offsets = [0, 0], sizes = [8, 256], strides = [1, 1]} : vector<8x384xf32> to vector<8x256xf32>
    %151 = arith.addf %149, %150 : vector<8x256xf32>
    %152 = arith.negf %151 : vector<8x256xf32>
    %153 = math.exp %152 : vector<8x256xf32>
    %cst_33 = arith.constant 1.000000e+00 : f32
    %154 = vector.broadcast %cst_33 : f32 to vector<8x256xf32>
    %155 = arith.addf %154, %153 : vector<8x256xf32>
    %156 = arith.divf %154, %155 : vector<8x256xf32>
    %157 = vector.extract_strided_slice %156 {offsets = [0, 0], sizes = [8, 128], strides = [1, 1]} : vector<8x256xf32> to vector<8x128xf32>
    %158 = vector.extract_strided_slice %156 {offsets = [0, 128], sizes = [8, 128], strides = [1, 1]} : vector<8x256xf32> to vector<8x128xf32>
    %159 = vector.extract_strided_slice %147 {offsets = [0, 256], sizes = [8, 128], strides = [1, 1]} : vector<8x384xf32> to vector<8x128xf32>
    %160 = vector.extract_strided_slice %148 {offsets = [0, 256], sizes = [8, 128], strides = [1, 1]} : vector<8x384xf32> to vector<8x128xf32>
    %161 = vector.broadcast %13 : vector<1x128xf32> to vector<8x128xf32>
    %162 = arith.addf %160, %161 : vector<8x128xf32>
    %163 = arith.mulf %157, %162 : vector<8x128xf32>
    %164 = arith.addf %159, %163 : vector<8x128xf32>
    %165 = math.tanh %164 : vector<8x128xf32>
    %166 = arith.subf %146, %165 : vector<8x128xf32>
    %167 = arith.mulf %158, %166 : vector<8x128xf32>
    %168 = arith.addf %165, %167 : vector<8x128xf32>
    %c56 = arith.constant 56 : index
    %c0_34 = arith.constant 0 : index
    %169 = vector.load %arg8[%c56, %c0_34] : memref<64x384xf32, #tpu.memory_space<vmem>>, vector<8x384xf32>
    %cst_35 = arith.constant dense<0.000000e+00> : vector<8x384xf32>
    %170 = tpu.matmul %168, %12, %cst_35 {dimension_numbers = #tpu.dot_dimension_numbers<[1], [0], [0], [1], [0, 0, 1, 1], [], []>} : vector<8x128xf32>, vector<128x384xf32>, vector<8x384xf32> -> vector<8x384xf32>
    %171 = vector.extract_strided_slice %169 {offsets = [0, 0], sizes = [8, 256], strides = [1, 1]} : vector<8x384xf32> to vector<8x256xf32>
    %172 = vector.extract_strided_slice %170 {offsets = [0, 0], sizes = [8, 256], strides = [1, 1]} : vector<8x384xf32> to vector<8x256xf32>
    %173 = arith.addf %171, %172 : vector<8x256xf32>
    %174 = arith.negf %173 : vector<8x256xf32>
    %175 = math.exp %174 : vector<8x256xf32>
    %cst_36 = arith.constant 1.000000e+00 : f32
    %176 = vector.broadcast %cst_36 : f32 to vector<8x256xf32>
    %177 = arith.addf %176, %175 : vector<8x256xf32>
    %178 = arith.divf %176, %177 : vector<8x256xf32>
    %179 = vector.extract_strided_slice %178 {offsets = [0, 0], sizes = [8, 128], strides = [1, 1]} : vector<8x256xf32> to vector<8x128xf32>
    %180 = vector.extract_strided_slice %178 {offsets = [0, 128], sizes = [8, 128], strides = [1, 1]} : vector<8x256xf32> to vector<8x128xf32>
    %181 = vector.extract_strided_slice %169 {offsets = [0, 256], sizes = [8, 128], strides = [1, 1]} : vector<8x384xf32> to vector<8x128xf32>
    %182 = vector.extract_strided_slice %170 {offsets = [0, 256], sizes = [8, 128], strides = [1, 1]} : vector<8x384xf32> to vector<8x128xf32>
    %183 = vector.broadcast %13 : vector<1x128xf32> to vector<8x128xf32>
    %184 = arith.addf %182, %183 : vector<8x128xf32>
    %185 = arith.mulf %179, %184 : vector<8x128xf32>
    %186 = arith.addf %181, %185 : vector<8x128xf32>
    %187 = math.tanh %186 : vector<8x128xf32>
    %188 = arith.subf %168, %187 : vector<8x128xf32>
    %189 = arith.mulf %180, %188 : vector<8x128xf32>
    %190 = arith.addf %187, %189 : vector<8x128xf32>
    %cst_37 = arith.constant 0.000000e+00 : f32
    %191 = vector.broadcast %cst_37 : f32 to vector<8x128xf32>
    %192 = arith.maximumf %190, %191 : vector<8x128xf32>
    %c0_38 = arith.constant 0 : index
    %c0_39 = arith.constant 0 : index
    %193 = vector.load %arg5[%c0_38, %c0_39] : memref<128x128xf32, #tpu.memory_space<vmem>>, vector<128x128xf32>
    %cst_40 = arith.constant dense<0.000000e+00> : vector<8x128xf32>
    %194 = tpu.matmul %192, %193, %cst_40 {dimension_numbers = #tpu.dot_dimension_numbers<[1], [0], [0], [1], [0, 0, 1, 1], [], []>} : vector<8x128xf32>, vector<128x128xf32>, vector<8x128xf32> -> vector<8x128xf32>
    %c0_41 = arith.constant 0 : index
    %c0_42 = arith.constant 0 : index
    %195 = vector.load %arg6[%c0_41, %c0_42] : memref<1x128xf32, #tpu.memory_space<vmem>>, vector<1x128xf32>
    %196 = vector.broadcast %195 : vector<1x128xf32> to vector<8x128xf32>
    %197 = arith.addf %194, %196 : vector<8x128xf32>
    %c0_43 = arith.constant 0 : index
    %c0_44 = arith.constant 0 : index
    %198 = vector.load %arg7[%c0_43, %c0_44] : memref<8x128xf32, #tpu.memory_space<vmem>>, vector<8x128xf32>
    tpu.vector_store %arg7[%c0_43, %c0_44], %197 {strides = array<i32>} : memref<8x128xf32, #tpu.memory_space<vmem>>, vector<8x128xf32>,
    return
  }
}

</mosaic_0001>

<bundles_post_ra>
// kernel: tpu_custom_call.1
= control target key start
LH: loop header
LB: loop body
LE: loop exit
PB: predicated region body
PF: predicated region fallthrough
CT: control target
= control target key end

     0   :  { %12 = vsyncpa [#allocation4], 0  ;;  %s2468_s0 = inlined_call_operand.vmem [shape: s32[64,1], index: 0, kind: input, shape index: {}]   ;;  %s2469_s1 = inlined_call_operand.hbm [shape: f32[128,384], index: 1, kind: input, shape index: {}]   ;;  %s2470_s2 = inlined_call_operand.vmem [shape: f32[1,384], index: 2, kind: input, shape index: {}]   ;;  %s2471_s3 = inlined_call_operand.hbm [shape: f32[128,384], index: 3, kind: input, shape index: {}]   ;;  %s2472_s4 = inlined_call_operand.vmem [shape: f32[1,128], index: 4, kind: input, shape index: {}]   ;;  %s2473_s5 = inlined_call_operand.hbm [shape: f32[128,128], index: 5, kind: input, shape index: {}]   ;;  %s2474_s6 = inlined_call_operand.vmem [shape: f32[1,128], index: 6, kind: input, shape index: {}]   ;;  %s2475_s7 = inlined_call_operand.hbm [shape: f32[8,128], index: 7, kind: output, shape index: {}]  }
   0x1   :  { %13 = vsyncpa [#allocation7], 0 }
   0x2   :  { %14 = vsyncpa [#allocation5], 0  ;;  %s36_s26 = sshll.u32 %s2471_s3, 4  ;;  %s1622_s27 = smov [#allocation6]   ;;  %s37_s26 = int_to_ptr.hbm [resolvable:$true] %s36_s26 }
   0x3   :  { %s38_s28 = sshll.u32 %s1622_s27, 4  ;;  %s21_s8 = sshll.u32 %s2469_s1, 4  ;;  %s39_s28 = int_to_ptr.vmem [resolvable:$true] %s38_s28  ;;  %s22_s8 = int_to_ptr.hbm [resolvable:$true] %s21_s8 }
   0x4   :  { %s1623_s9 = smov 384   ;;  %s1624_s10 = smov 24  }
   0x5   :  { %44 = dma.hbm_to_vmem [thread:$0]  %s37_s26, 6144, %s39_s28, [#allocation7], %s1623_s9, %s1623_s9, %s1624_s10  }
   0x6   :  { %s1625_s11 = smov [#allocation3]   ;;  %s51_s15 = sshll.u32 %s2473_s5, 4  ;;  %s52_s15 = int_to_ptr.hbm [resolvable:$true] %s51_s15 }
   0x7   :  { %s23_s12 = sshll.u32 %s1625_s11, 4  ;;  %s1626_s3 = smov [#allocation8]   ;;  %s24_s12 = int_to_ptr.vmem [resolvable:$true] %s23_s12 }
   0x8   :  { %29 = dma.hbm_to_vmem [thread:$0]  %s22_s8, 6144, %s24_s12, [#allocation4], %s1623_s9, %s1623_s9, %s1624_s10  }
   0x9   :  { %s53_s16 = sshll.u32 %s1626_s3, 4  ;;  %s1627_s17 = smov 128   ;;  %s54_s16 = int_to_ptr.vmem [resolvable:$true] %s53_s16 }
   0xa   :  { %s1628_s18 = smov 8  }
   0xb   :  { %59 = dma.hbm_to_vmem [thread:$0]  %s52_s15, 2048, %s54_s16, [#allocation7], %s1627_s17, %s1627_s17, %s1628_s18  }
   0xc   :  { %1616 = dma.done.wait [#allocation4], 6144  }
   0xd   :  { %1617 = vsyncadd [#allocation4], 4294961152 }
   0xe   :  { %1618 = dma.done.wait [#allocation7], 8192  }
   0xf   :  { %1619 = vsyncadd [#allocation7], 4294959104  ;;  %v1629_v0 = vmov 0   ;;  %v76_v1 = vld [vmem:[%s2468_s0 + $0x10] sm:$0xff]  ;;  %v74_v2 = vld [vmem:[%s2468_s0] sm:$0xff]  ;;  %s1632_s15 = smov [#allocation9]  }
  0x10   :  { %1387 = vset.pattern.permute.xlu1 %v1629_v0  ;;  %1386 = vset.pattern.permute.xlu0 %v1629_v0  ;;  %v78_v3 = vld [vmem:[%s2468_s0 + $0x20] sm:$0xff]  ;;  %v1691_v4 = vld [vmem:[#allocation6 + $0x168] sm:$0xff]  ;;  %v1693_v5 = vld [vmem:[#allocation6 + $0x150] sm:$0xff]  ;;  %s1314_s3 = sshll.u32 %s1632_s15, 4  ;;  %s1316_s18 = sshll.u32 %s2475_s7, 4  ;;  %s1315_s3 = int_to_ptr.vmem [resolvable:$true] %s1314_s3  ;;  %s1317_s18 = int_to_ptr.hbm [resolvable:$true] %s1316_s18 }
  0x11   :  { %1388 = vset.pattern.permute.xlu2 %v1629_v0  ;;  %91 = vperm.xlu1 %1387, %v76_v1   ;;  %v1696_v6 = vld [vmem:[#allocation6 + $0x138] sm:$0xff]  ;;  %v75_v8 = vld [vmem:[%s2468_s0 + $0x8] sm:$0xff]  ;;  %v1706_v9 = vld [vmem:[#allocation6 + $0x120] sm:$0xff] }
  0x12   :  { %85 = vperm.xlu0 %1386, %v74_v2   ;;  %97 = vperm.xlu2 %1388, %v78_v3   ;;  %v77_v7 = vld [vmem:[%s2468_s0 + $0x18] sm:$0xff]  ;;  %v79_v10 = vld [vmem:[%s2468_s0 + $0x28] sm:$0xff]  ;;  %v178_v13 = vld [vmem:[#allocation3 + $0x170] sm:$0xff]  ;;  %v1630_v3 = vmov 0.0  }
  0x13   :  { %387 = vmatpush.msra.mxu3 %v1691_v4  ;;  %v177_v11 = vld [vmem:[#allocation3 + $0x168] sm:$0xff]  ;;  %v179_v14 = vld [vmem:[#allocation3 + $0x178] sm:$0xff]  ;;  %v174_v15 = vld [vmem:[#allocation3 + $0x150] sm:$0xff]  ;;  %229 = vmatpush.msra.mxu1 %v178_v13 }
  0x14   :  { %v1711_v12 = vld [vmem:[#allocation6 + $0x108] sm:$0xff]  ;;  %188 = vmatpush.msra.mxu0 %v177_v11  ;;  %v175_v16 = vld [vmem:[#allocation3 + $0x158] sm:$0xff]  ;;  %v1714_v17 = vld [vmem:[#allocation6 + $0xf0] sm:$0xff]  ;;  %270 = vmatpush.msra.mxu2 %v179_v14 }
  0x15   :  { %388 = vmatpush.msra.mxu3 %v1693_v5  ;;  %v176_v18 = vld [vmem:[#allocation3 + $0x160] sm:$0xff]  ;;  %v171_v19 = vld [vmem:[#allocation3 + $0x138] sm:$0xff]  ;;  %230 = vmatpush.msra.mxu1 %v175_v16  ;;  %v173_v22 = vld [vmem:[#allocation3 + $0x148] sm:$0xff] }
  0x16   :  { %v172_v20 = vld [vmem:[#allocation3 + $0x140] sm:$0xff]  ;;  %v1717_v21 = vld [vmem:[#allocation6 + $0xd8] sm:$0xff]  ;;  %189 = vmatpush.msra.mxu0 %v174_v15  ;;  %v80_v24 = vld [vmem:[%s2468_s0 + $0x30] sm:$0xff]  ;;  %271 = vmatpush.msra.mxu2 %v176_v18 }
  0x17   :  { %389 = vmatpush.msra.mxu3 %v1696_v6  ;;  %v81_v23 = vld [vmem:[%s2468_s0 + $0x38] sm:$0xff]  ;;  %v1726_v25 = vld [vmem:[#allocation6 + $0xc0] sm:$0xff]  ;;  %231 = vmatpush.msra.mxu1 %v172_v20  ;;  %v169_v27 = vld [vmem:[#allocation3 + $0x128] sm:$0xff] }
  0x18   :  { %190 = vmatpush.msra.mxu0 %v171_v19  ;;  %v168_v26 = vld [vmem:[#allocation3 + $0x120] sm:$0xff]  ;;  %272 = vmatpush.msra.mxu2 %v173_v22  ;;  %v170_v28 = vld [vmem:[#allocation3 + $0x130] sm:$0xff]  ;;  %v1729_v29 = vld [vmem:[#allocation6 + $0xa8] sm:$0xff] }
  0x19   :  { %94 = vperm.xlu1 %1387, %v77_v7   ;;  %390 = vmatpush.msra.mxu3 %v1706_v9  ;;  %v165_v30 = vld [vmem:[#allocation3 + $0x108] sm:$0xff]  ;;  %v166_v31 = vld [vmem:[#allocation3 + $0x110] sm:$0xff]  ;;  %v167_v32 = vld [vmem:[#allocation3 + $0x118] sm:$0xff] }
  0x1a   :  { %88 = vperm.xlu0 %1386, %v75_v8   ;;  %100 = vperm.xlu2 %1388, %v79_v10   ;;  %v1732_v33 = vld [vmem:[#allocation6 + $0x90] sm:$0xff]  ;;  %v163_v35 = vld [vmem:[#allocation3 + $0xf8] sm:$0xff]  ;;  %v164_v36 = vld [vmem:[#allocation3 + $0x100] sm:$0xff] }
  0x1b   :  { %391 = vmatpush.msra.mxu3 %v1711_v12  ;;  %191 = vmatpush.msra.mxu0 %v168_v26  ;;  %v162_v34 = vld [vmem:[#allocation3 + $0xf0] sm:$0xff]  ;;  %v1735_v37 = vld [vmem:[#allocation6 + $0x78] sm:$0xff]  ;;  %v160_v39 = vld [vmem:[#allocation3 + $0xe0] sm:$0xff] }
  0x1c   :  { %232 = vmatpush.msra.mxu1 %v169_v27  ;;  %273 = vmatpush.msra.mxu2 %v170_v28  ;;  %v159_v38 = vld [vmem:[#allocation3 + $0xd8] sm:$0xff]  ;;  %v161_v40 = vld [vmem:[#allocation3 + $0xe8] sm:$0xff]  ;;  %v1738_v41 = vld [vmem:[#allocation6 + $0x60] sm:$0xff] }
  0x1d   :  { %392 = vmatpush.msra.mxu3 %v1714_v17  ;;  %192 = vmatpush.msra.mxu0 %v165_v30  ;;  %v156_v42 = vld [vmem:[#allocation3 + $0xc0] sm:$0xff]  ;;  %v157_v43 = vld [vmem:[#allocation3 + $0xc8] sm:$0xff]  ;;  %v158_v44 = vld [vmem:[#allocation3 + $0xd0] sm:$0xff] }
  0x1e   :  { %233 = vmatpush.msra.mxu1 %v166_v31  ;;  %274 = vmatpush.msra.mxu2 %v167_v32  ;;  %v1741_v45 = vld [vmem:[#allocation6 + $0x48] sm:$0xff]  ;;  %v154_v47 = vld [vmem:[#allocation3 + $0xb0] sm:$0xff]  ;;  %v155_v48 = vld [vmem:[#allocation3 + $0xb8] sm:$0xff] }
  0x1f   :  { %393 = vmatpush.msra.mxu3 %v1717_v21  ;;  %193 = vmatpush.msra.mxu0 %v162_v34  ;;  %v153_v46 = vld [vmem:[#allocation3 + $0xa8] sm:$0xff]  ;;  %v1744_v49 = vld [vmem:[#allocation6 + $0x30] sm:$0xff]  ;;  %v151_v51 = vld [vmem:[#allocation3 + $0x98] sm:$0xff] }
  0x20   :  { %234 = vmatpush.msra.mxu1 %v163_v35  ;;  %275 = vmatpush.msra.mxu2 %v164_v36  ;;  %v150_v50 = vld [vmem:[#allocation3 + $0x90] sm:$0xff]  ;;  %v152_v52 = vld [vmem:[#allocation3 + $0xa0] sm:$0xff]  ;;  %v1747_v53 = vld [vmem:[#allocation6 + $0x18] sm:$0xff] }
  0x21   :  { %106 = vperm.xlu1 %1387, %v81_v23   ;;  %394 = vmatpush.msra.mxu3 %v1726_v25  ;;  %2489 = vst [vmem:[#allocation13_spill] sm:$0xff] %v1747_v53  ;;  %v147_v54 = vld [vmem:[#allocation3 + $0x78] sm:$0xff]  ;;  %v148_v55 = vld [vmem:[#allocation3 + $0x80] sm:$0xff]  ;;  %v149_v56 = vld [vmem:[#allocation3 + $0x88] sm:$0xff] }
  0x22   :  { %103 = vperm.xlu0 %1386, %v80_v24   ;;  %194 = vmatpush.msra.mxu0 %v159_v38  ;;  %v1750_v57 = vld [vmem:[#allocation6] sm:$0xff]  ;;  %v1753_v59 = vld [vmem:[#allocation6 + $0x170] sm:$0xff]  ;;  %v145_v60 = vld [vmem:[#allocation3 + $0x68] sm:$0xff] }
  0x23   :  { %395 = vmatpush.msra.mxu3 %v1729_v29  ;;  %235 = vmatpush.msra.mxu1 %v160_v39  ;;  %2490 = vst [vmem:[#allocation14_spill] sm:$0xff] %v1750_v57  ;;  %v144_v58 = vld [vmem:[#allocation3 + $0x60] sm:$0xff]  ;;  %v146_v61 = vld [vmem:[#allocation3 + $0x70] sm:$0xff]  ;;  %v1756_v62 = vld [vmem:[#allocation6 + $0x158] sm:$0xff] }
  0x24   :  { %276 = vmatpush.msra.mxu2 %v161_v40  ;;  %195 = vmatpush.msra.mxu0 %v156_v42  ;;  %v141_v63 = vld [vmem:[#allocation3 + $0x48] sm:$0xff]  ;;  %v142_v0 = vld [vmem:[#allocation3 + $0x50] sm:$0xff]  ;;  %v143_v1 = vld [vmem:[#allocation3 + $0x58] sm:$0xff] }
  0x25   :  { %396 = vmatpush.msra.mxu3 %v1732_v33  ;;  %236 = vmatpush.msra.mxu1 %v157_v43  ;;  %v1759_v2 = vld [vmem:[#allocation6 + $0x140] sm:$0xff]  ;;  %v138_v7 = vld [vmem:[#allocation3 + $0x30] sm:$0xff]  ;;  %v139_v8 = vld [vmem:[#allocation3 + $0x38] sm:$0xff] }
  0x26   :  { %277 = vmatpush.msra.mxu2 %v158_v44  ;;  %196 = vmatpush.msra.mxu0 %v153_v46  ;;  %v140_v10 = vld [vmem:[#allocation3 + $0x40] sm:$0xff]  ;;  %v1763_v11 = vld [vmem:[#allocation6 + $0x128] sm:$0xff]  ;;  %v135_v13 = vld [vmem:[#allocation3 + $0x18] sm:$0xff]  ;;  %v82_v44 = vlaneseq }
  0x27   :  { %397 = vmatpush.msra.mxu3 %v1735_v37  ;;  %237 = vmatpush.msra.mxu1 %v154_v47  ;;  %v136_v14 = vld [vmem:[#allocation3 + $0x20] sm:$0xff]  ;;  %v137_v15 = vld [vmem:[#allocation3 + $0x28] sm:$0xff]  ;;  %v1766_v16 = vld [vmem:[#allocation6 + $0x110] sm:$0xff] }
  0x28   :  { %278 = vmatpush.msra.mxu2 %v155_v48  ;;  %197 = vmatpush.msra.mxu0 %v150_v50  ;;  %v1769_v18 = vld [vmem:[#allocation6 + $0xf8] sm:$0xff]  ;;  %v1772_v19 = vld [vmem:[#allocation6 + $0xe0] sm:$0xff]  ;;  %v1775_v20 = vld [vmem:[#allocation6 + $0xc8] sm:$0xff]  ;;  %v1860_v48 = vand.u32 127, %v82_v44 }
  0x29   :  { %398 = vmatpush.msra.mxu3 %v1738_v41  ;;  %238 = vmatpush.msra.mxu1 %v151_v51  ;;  %v1778_v22 = vld [vmem:[#allocation6 + $0xb0] sm:$0xff]  ;;  %v1781_v23 = vld [vmem:[#allocation6 + $0x98] sm:$0xff]  ;;  %v1784_v24 = vld [vmem:[#allocation6 + $0x80] sm:$0xff]  ;;  %v1631_v51 = vmov 1.0  }
  0x2a   :  { %279 = vmatpush.msra.mxu2 %v152_v52  ;;  %198 = vmatpush.msra.mxu0 %v147_v54  ;;  %v1787_v26 = vld [vmem:[#allocation6 + $0x68] sm:$0xff]  ;;  %v1790_v27 = vld [vmem:[#allocation6 + $0x50] sm:$0xff]  ;;  %v1793_v28 = vld [vmem:[#allocation6 + $0x38] sm:$0xff] }
  0x2b   :  { %399 = vmatpush.msra.mxu3 %v1741_v45  ;;  %239 = vmatpush.msra.mxu1 %v148_v55  ;;  %2491 = vst [vmem:[#allocation15_spill] sm:$0xff] %v1793_v28  ;;  %v1796_v30 = vld [vmem:[#allocation6 + $0x20] sm:$0xff]  ;;  %v1799_v31 = vld [vmem:[#allocation6 + $0x8] sm:$0xff]  ;;  %v134_v35 = vld [vmem:[#allocation3 + $0x10] sm:$0xff] }
  0x2c   :  { %280 = vmatpush.msra.mxu2 %v149_v56  ;;  %199 = vmatpush.msra.mxu0 %v144_v58  ;;  %2492 = vst [vmem:[#allocation16_spill] sm:$0xff] %v1796_v30  ;;  %v132_v32 = vld [vmem:[#allocation3] sm:$0xff]  ;;  %v133_v34 = vld [vmem:[#allocation3 + $0x8] sm:$0xff]  ;;  %v1805_v36 = vld [vmem:[#allocation6 + $0x178] sm:$0xff] }
  0x2d   :  { %400 = vmatpush.msra.mxu3 %v1744_v49  ;;  %240 = vmatpush.msra.mxu1 %v145_v60  ;;  %2493 = vst [vmem:[#allocation17_spill] sm:$0xff] %v1799_v31  ;;  %v1807_v38 = vld [vmem:[#allocation6 + $0x160] sm:$0xff]  ;;  %v1821_v39 = vld [vmem:[#allocation6 + $0x148] sm:$0xff]  ;;  %v1823_v40 = vld [vmem:[#allocation6 + $0x130] sm:$0xff] }
  0x2e   :  { %281 = vmatpush.msra.mxu2 %v146_v61  ;;  %200 = vmatpush.msra.mxu0 %v141_v63  ;;  %v1837_v42 = vld [vmem:[#allocation6 + $0x118] sm:$0xff]  ;;  %v1839_v43 = vld [vmem:[#allocation6 + $0x100] sm:$0xff]  ;;  %v1853_v46 = vld [vmem:[#allocation6 + $0xe8] sm:$0xff] }
  0x2f   :  { %401 = vmatpush.msra.mxu3 %v1747_v53  ;;  %241 = vmatpush.msra.mxu1 %v142_v0  ;;  %v1855_v47 = vld [vmem:[#allocation6 + $0xd0] sm:$0xff]  ;;  %v1874_v52 = vld [vmem:[#allocation6 + $0xb8] sm:$0xff]  ;;  %v1876_v54 = vld [vmem:[#allocation6 + $0xa0] sm:$0xff] }
  0x30   :  { %282 = vmatpush.msra.mxu2 %v143_v1  ;;  %201 = vmatpush.msra.mxu0 %v138_v7  ;;  %v1893_v56 = vld [vmem:[#allocation6 + $0x88] sm:$0xff]  ;;  %v1895_v58 = vld [vmem:[#allocation6 + $0x70] sm:$0xff]  ;;  %v1912_v61 = vld [vmem:[#allocation6 + $0x58] sm:$0xff] }
  0x31   :  { %402 = vmatpush.msra.mxu3 %v1750_v57  ;;  %242 = vmatpush.msra.mxu1 %v139_v8  ;;  %v1914_v63 = vld [vmem:[#allocation6 + $0x40] sm:$0xff]  ;;  %v1931_v1 = vld [vmem:[#allocation6 + $0x28] sm:$0xff]  ;;  %v1933_v7 = vld [vmem:[#allocation6 + $0x10] sm:$0xff] }
  0x32   :  { %403 = vmatmul.f32.vlgmr.msra.gmra.mxu3 %v1630_v3  ;;  %283 = vmatpush.msra.mxu2 %v140_v10  ;;  %2494 = vst [vmem:[#allocation18_spill] sm:$0xff] %v1931_v1 }
  0x33   :  { %407 = vmatpush.msrb.mxu3 %v1753_v59  ;;  %202 = vmatpush.msra.mxu0 %v135_v13  ;;  %2495 = vst [vmem:[#allocation19_spill] sm:$0xff] %v1933_v7 }
  0x34   :  { %243 = vmatpush.msra.mxu1 %v136_v14  ;;  %284 = vmatpush.msra.mxu2 %v137_v15 }
  0x35   :  { %408 = vmatpush.msrb.mxu3 %v1756_v62  ;;  %203 = vmatpush.msra.mxu0 %v132_v32  ;;  %v180_v32 = vld [vmem:[%s2470_s2] sm:$0x7] }
  0x36   :  { %244 = vmatpush.msra.mxu1 %v133_v34  ;;  %285 = vmatpush.msra.mxu2 %v134_v35  ;;  %v182_v34 = vperm.slane %v180_v32, 0  ;;  %v2018_v35 = vperm.slane %v180_v32, 1 }
  0x37   :  { %409 = vmatpush.msrb.mxu3 %v1759_v2  ;;  %427 = vmatpush.msrb.mxu0 %v1805_v36 }
  0x38   :  { %500 = vmatpush.msrb.mxu1 %v1691_v4  ;;  %520 = vmatpush.msrb.mxu2 %v1753_v59  ;;  %2496 = vst [vmem:[#allocation20_spill] sm:$0xff] %v2018_v35 }
  0x39   :  { %410 = vmatpush.msrb.mxu3 %v1763_v11  ;;  %428 = vmatpush.msrb.mxu0 %v1807_v38 }
  0x3a   :  { %501 = vmatpush.msrb.mxu1 %v1693_v5  ;;  %521 = vmatpush.msrb.mxu2 %v1756_v62 }
  0x3b   :  { %411 = vmatpush.msrb.mxu3 %v1766_v16  ;;  %429 = vmatpush.msrb.mxu0 %v1821_v39 }
  0x3c   :  { %502 = vmatpush.msrb.mxu1 %v1696_v6  ;;  %522 = vmatpush.msrb.mxu2 %v1759_v2 }
  0x3d   :  { %412 = vmatpush.msrb.mxu3 %v1769_v18  ;;  %430 = vmatpush.msrb.mxu0 %v1823_v40 }
  0x3e   :  { %503 = vmatpush.msrb.mxu1 %v1706_v9  ;;  %523 = vmatpush.msrb.mxu2 %v1763_v11 }
  0x3f   :  { %413 = vmatpush.msrb.mxu3 %v1772_v19  ;;  %431 = vmatpush.msrb.mxu0 %v1837_v42 }
  0x40   :  { %504 = vmatpush.msrb.mxu1 %v1711_v12  ;;  %524 = vmatpush.msrb.mxu2 %v1766_v16 }
  0x41   :  { %414 = vmatpush.msrb.mxu3 %v1775_v20  ;;  %432 = vmatpush.msrb.mxu0 %v1839_v43 }
  0x42   :  { %505 = vmatpush.msrb.mxu1 %v1714_v17  ;;  %525 = vmatpush.msrb.mxu2 %v1769_v18 }
  0x43   :  { %415 = vmatpush.msrb.mxu3 %v1778_v22  ;;  %433 = vmatpush.msrb.mxu0 %v1853_v46 }
  0x44   :  { %506 = vmatpush.msrb.mxu1 %v1717_v21  ;;  %526 = vmatpush.msrb.mxu2 %v1772_v19 }
  0x45   :  { %416 = vmatpush.msrb.mxu3 %v1781_v23  ;;  %434 = vmatpush.msrb.mxu0 %v1855_v47 }
  0x46   :  { %507 = vmatpush.msrb.mxu1 %v1726_v25  ;;  %527 = vmatpush.msrb.mxu2 %v1775_v20 }
  0x47   :  { %417 = vmatpush.msrb.mxu3 %v1784_v24  ;;  %435 = vmatpush.msrb.mxu0 %v1874_v52 }
  0x48   :  { %508 = vmatpush.msrb.mxu1 %v1729_v29  ;;  %528 = vmatpush.msrb.mxu2 %v1778_v22 }
  0x49   :  { %418 = vmatpush.msrb.mxu3 %v1787_v26  ;;  %436 = vmatpush.msrb.mxu0 %v1876_v54 }
  0x4a   :  { %509 = vmatpush.msrb.mxu1 %v1732_v33  ;;  %529 = vmatpush.msrb.mxu2 %v1781_v23 }
  0x4b   :  { %419 = vmatpush.msrb.mxu3 %v1790_v27  ;;  %437 = vmatpush.msrb.mxu0 %v1893_v56 }
  0x4c   :  { %510 = vmatpush.msrb.mxu1 %v1735_v37  ;;  %530 = vmatpush.msrb.mxu2 %v1784_v24 }
  0x4d   :  { %420 = vmatpush.msrb.mxu3 %v1793_v28  ;;  %438 = vmatpush.msrb.mxu0 %v1895_v58 }
  0x4e   :  { %511 = vmatpush.msrb.mxu1 %v1738_v41  ;;  %531 = vmatpush.msrb.mxu2 %v1787_v26 }
  0x4f   :  { %421 = vmatpush.msrb.mxu3 %v1796_v30  ;;  %439 = vmatpush.msrb.mxu0 %v1912_v61 }
  0x50   :  { %512 = vmatpush.msrb.mxu1 %v1741_v45  ;;  %532 = vmatpush.msrb.mxu2 %v1790_v27 }
  0x51   :  { %422 = vmatpush.msrb.mxu3 %v1799_v31  ;;  %440 = vmatpush.msrb.mxu0 %v1914_v63 }
  0x52   :  { %423 = vmatmul.f32.vlgmr.msrb.gmra.mxu3 %v1630_v3  ;;  %513 = vmatpush.msrb.mxu1 %v1744_v49 }
  0x53   :  { %540 = vmatpush.msra.mxu3 %v1805_v36  ;;  %533 = vmatpush.msrb.mxu2 %v1793_v28 }
  0x54   :  { %514 = vmatpush.msrb.mxu1 %v1747_v53  ;;  %441 = vmatpush.msrb.mxu0 %v1931_v1 }
  0x55   :  { %541 = vmatpush.msra.mxu3 %v1807_v38  ;;  %534 = vmatpush.msrb.mxu2 %v1796_v30 }
  0x56   :  { %515 = vmatpush.msrb.mxu1 %v1750_v57  ;;  %442 = vmatpush.msrb.mxu0 %v1933_v7 }
  0x57   :  { %542 = vmatpush.msra.mxu3 %v1821_v39  ;;  %535 = vmatpush.msrb.mxu2 %v1799_v31 }
  0x59   :  { %543 = vmatpush.msra.mxu3 %v1823_v40 }
  0x5b   :  { %544 = vmatpush.msra.mxu3 %v1837_v42 }
  0x5d   :  { %545 = vmatpush.msra.mxu3 %v1839_v43 }
  0x5f   :  { %546 = vmatpush.msra.mxu3 %v1853_v46 }
  0x61   :  { %547 = vmatpush.msra.mxu3 %v1855_v47 }
  0x63   :  { %548 = vmatpush.msra.mxu3 %v1874_v52 }
  0x65   :  { %549 = vmatpush.msra.mxu3 %v1876_v54 }
  0x67   :  { %550 = vmatpush.msra.mxu3 %v1893_v56 }
  0x69   :  { %551 = vmatpush.msra.mxu3 %v1895_v58 }
  0x6b   :  { %552 = vmatpush.msra.mxu3 %v1912_v61 }
  0x6c   :  { %v98_v8 = vpop.permute.xlu2 %97 }
  0x6d   :  { %553 = vmatpush.msra.mxu3 %v1914_v63  ;;  %vm112_vm4 = vcmp.eq.s32.totalorder %v1860_v48, %v98_v8 }
  0x6f   :  { %554 = vmatpush.msra.mxu3 %v1931_v1 }
  0x71   :  { %555 = vmatpush.msra.mxu3 %v1933_v7 }
  0x73   :  { %720 = vmatpush.msrb.mxu3 %v1691_v4 }
  0x74   :  { %v101_v10 = vpop.permute.xlu2 %100 }
  0x75   :  { %721 = vmatpush.msrb.mxu3 %v1693_v5  ;;  %vm113_vm5 = vcmp.eq.s32.totalorder %v1860_v48, %v101_v10 }
  0x77   :  { %722 = vmatpush.msrb.mxu3 %v1696_v6 }
  0x79   :  { %723 = vmatpush.msrb.mxu3 %v1706_v9 }
  0x7b   :  { %724 = vmatpush.msrb.mxu3 %v1711_v12 }
  0x7d   :  { %725 = vmatpush.msrb.mxu3 %v1714_v17 }
  0x7f   :  { %726 = vmatpush.msrb.mxu3 %v1717_v21 }
  0x81   :  { %727 = vmatpush.msrb.mxu3 %v1726_v25 }
  0x83   :  { %v92_v60 = vpop.permute.xlu1 %91  ;;  %728 = vmatpush.msrb.mxu3 %v1729_v29 }
  0x84   :  { %v86_v50 = vpop.permute.xlu0 %85  ;;  %vm110_vm2 = vcmp.eq.s32.totalorder %v1860_v48, %v92_v60 }
  0x85   :  { %vm108_vm0 = vcmp.eq.s32.totalorder %v1860_v48, %v86_v50  ;;  %729 = vmatpush.msrb.mxu3 %v1732_v33 }
  0x86   :  { %1335 = vmatmul.msk.f32.vlgmr.msra.gmra.mxu0 %vm108_vm0, %v1631_v51  ;;  %1343 = vmatmul.msk.f32.vlgmr.msra.gmra.mxu1 %vm108_vm0, %v1631_v51 }
  0x87   :  { %1351 = vmatmul.msk.f32.vlgmr.msra.gmra.mxu2 %vm108_vm0, %v1631_v51  ;;  %630 = vmatpush.msra.mxu1 %v1753_v59 }
  0x88   :  { %650 = vmatpush.msra.mxu2 %v1805_v36  ;;  %610 = vmatpush.msra.mxu0 %v1691_v4 }
  0x89   :  { %631 = vmatpush.msra.mxu1 %v1756_v62  ;;  %730 = vmatpush.msrb.mxu3 %v1735_v37 }
  0x8a   :  { %651 = vmatpush.msra.mxu2 %v1807_v38  ;;  %611 = vmatpush.msra.mxu0 %v1693_v5 }
  0x8b   :  { %632 = vmatpush.msra.mxu1 %v1759_v2  ;;  %v95_v0 = vpop.permute.xlu1 %94  ;;  %731 = vmatpush.msrb.mxu3 %v1738_v41 }
  0x8c   :  { %v89_v55 = vpop.permute.xlu0 %88  ;;  %652 = vmatpush.msra.mxu2 %v1821_v39  ;;  %vm111_vm3 = vcmp.eq.s32.totalorder %v1860_v48, %v95_v0  ;;  %612 = vmatpush.msra.mxu0 %v1696_v6  ;;  %v2027_v0 = vperm.slane %v180_v32, 2 }
  0x8d   :  { %vm109_vm1 = vcmp.eq.s32.totalorder %v1860_v48, %v89_v55  ;;  %633 = vmatpush.msra.mxu1 %v1763_v11  ;;  %732 = vmatpush.msrb.mxu3 %v1741_v45 }
  0x8e   :  { %1336 = vmatmul.msk.f32.gmra.mxu0 %vm109_vm1, %v1631_v51  ;;  %1344 = vmatmul.msk.f32.gmra.mxu1 %vm109_vm1, %v1631_v51 }
  0x8f   :  { %1352 = vmatmul.msk.f32.gmra.mxu2 %vm109_vm1, %v1631_v51  ;;  %634 = vmatpush.msra.mxu1 %v1766_v16 }
  0x90   :  { %653 = vmatpush.msra.mxu2 %v1823_v40  ;;  %613 = vmatpush.msra.mxu0 %v1706_v9 }
  0x91   :  { %635 = vmatpush.msra.mxu1 %v1769_v18  ;;  %733 = vmatpush.msrb.mxu3 %v1744_v49 }
  0x92   :  { %654 = vmatpush.msra.mxu2 %v1837_v42  ;;  %614 = vmatpush.msra.mxu0 %v1711_v12 }
  0x93   :  { %636 = vmatpush.msra.mxu1 %v1772_v19  ;;  %v107_v14 = vpop.permute.xlu1 %106  ;;  %734 = vmatpush.msrb.mxu3 %v1747_v53 }
  0x94   :  { %655 = vmatpush.msra.mxu2 %v1839_v43  ;;  %615 = vmatpush.msra.mxu0 %v1714_v17  ;;  %v104_v13 = vpop.permute.xlu0 %103  ;;  %vm115_vm7 = vcmp.eq.s32.totalorder %v1860_v48, %v107_v14 }
  0x95   :  { %637 = vmatpush.msra.mxu1 %v1775_v20  ;;  %vm114_vm6 = vcmp.eq.s32.totalorder %v1860_v48, %v104_v13  ;;  %735 = vmatpush.msrb.mxu3 %v1750_v57 }
  0x96   :  { %1337 = vmatmul.msk.f32.gmra.mxu0 %vm110_vm2, %v1631_v51  ;;  %1345 = vmatmul.msk.f32.gmra.mxu1 %vm110_vm2, %v1631_v51 }
  0x97   :  { %1353 = vmatmul.msk.f32.gmra.mxu2 %vm110_vm2, %v1631_v51  ;;  %638 = vmatpush.msra.mxu1 %v1778_v22 }
  0x98   :  { %656 = vmatpush.msra.mxu2 %v1853_v46  ;;  %616 = vmatpush.msra.mxu0 %v1717_v21 }
  0x99   :  { %639 = vmatpush.msra.mxu1 %v1781_v23 }
  0x9a   :  { %657 = vmatpush.msra.mxu2 %v1855_v47  ;;  %617 = vmatpush.msra.mxu0 %v1726_v25 }
  0x9b   :  { %640 = vmatpush.msra.mxu1 %v1784_v24 }
  0x9c   :  { %658 = vmatpush.msra.mxu2 %v1874_v52  ;;  %618 = vmatpush.msra.mxu0 %v1729_v29 }
  0x9d   :  { %641 = vmatpush.msra.mxu1 %v1787_v26 }
  0x9e   :  { %1338 = vmatmul.msk.f32.gmra.mxu0 %vm111_vm3, %v1631_v51  ;;  %1346 = vmatmul.msk.f32.gmra.mxu1 %vm111_vm3, %v1631_v51 }
  0x9f   :  { %1354 = vmatmul.msk.f32.gmra.mxu2 %vm111_vm3, %v1631_v51  ;;  %642 = vmatpush.msra.mxu1 %v1790_v27 }
  0xa0   :  { %659 = vmatpush.msra.mxu2 %v1876_v54  ;;  %619 = vmatpush.msra.mxu0 %v1732_v33 }
  0xa1   :  { %643 = vmatpush.msra.mxu1 %v1793_v28 }
  0xa2   :  { %660 = vmatpush.msra.mxu2 %v1893_v56  ;;  %620 = vmatpush.msra.mxu0 %v1735_v37 }
  0xa3   :  { %644 = vmatpush.msra.mxu1 %v1796_v30 }
  0xa4   :  { %661 = vmatpush.msra.mxu2 %v1895_v58  ;;  %621 = vmatpush.msra.mxu0 %v1738_v41 }
  0xa5   :  { %645 = vmatpush.msra.mxu1 %v1799_v31 }
  0xa6   :  { %1339 = vmatmul.msk.f32.gmra.mxu0 %vm112_vm4, %v1631_v51  ;;  %1347 = vmatmul.msk.f32.gmra.mxu1 %vm112_vm4, %v1631_v51 }
  0xa7   :  { %1355 = vmatmul.msk.f32.gmra.mxu2 %vm112_vm4, %v1631_v51  ;;  %622 = vmatpush.msra.mxu0 %v1741_v45 }
  0xa8   :  { %662 = vmatpush.msra.mxu2 %v1912_v61 }
  0xa9   :  { %623 = vmatpush.msra.mxu0 %v1744_v49 }
  0xaa   :  { %663 = vmatpush.msra.mxu2 %v1914_v63 }
  0xab   :  { %624 = vmatpush.msra.mxu0 %v1747_v53 }
  0xac   :  { %664 = vmatpush.msra.mxu2 %v1931_v1 }
  0xad   :  { %625 = vmatpush.msra.mxu0 %v1750_v57 }
  0xae   :  { %1340 = vmatmul.msk.f32.gmra.mxu0 %vm113_vm5, %v1631_v51  ;;  %1348 = vmatmul.msk.f32.gmra.mxu1 %vm113_vm5, %v1631_v51 }
  0xaf   :  { %1356 = vmatmul.msk.f32.gmra.mxu2 %vm113_vm5, %v1631_v51 }
  0xb0   :  { %665 = vmatpush.msra.mxu2 %v1933_v7 }
  0xb5   :  { %v404_v8 = vpop.f32.mrf.mxu3 }
  0xb6   :  { %1341 = vmatmul.msk.f32.gmra.mxu0 %vm114_vm6, %v1631_v51  ;;  %1349 = vmatmul.msk.f32.gmra.mxu1 %vm114_vm6, %v1631_v51 }
  0xb7   :  { %1357 = vmatmul.msk.f32.gmra.mxu2 %vm114_vm6, %v1631_v51 }
  0xbe   :  { %1342 = vmatmul.msk.f32.gmra.mxu0 %vm115_vm7, %v1631_v51  ;;  %1350 = vmatmul.msk.f32.gmra.mxu1 %vm115_vm7, %v1631_v51 }
  0xbf   :  { %1358 = vmatmul.msk.f32.gmra.mxu2 %vm115_vm7, %v1631_v51 }
  0xc6   :  { %443 = vmatmul.f32.vlgmr.msrb.gmra.mxu0 %v1630_v3 }
  0xc7   :  { %740 = vmatpush.msrb.mxu0 %v1753_v59 }
  0xc9   :  { %741 = vmatpush.msrb.mxu0 %v1756_v62 }
  0xcb   :  { %742 = vmatpush.msrb.mxu0 %v1759_v2 }
  0xcd   :  { %743 = vmatpush.msrb.mxu0 %v1763_v11 }
  0xcf   :  { %744 = vmatpush.msrb.mxu0 %v1766_v16 }
  0xd1   :  { %745 = vmatpush.msrb.mxu0 %v1769_v18 }
  0xd3   :  { %746 = vmatpush.msrb.mxu0 %v1772_v19 }
  0xd5   :  { %747 = vmatpush.msrb.mxu0 %v1775_v20 }
  0xd7   :  { %748 = vmatpush.msrb.mxu0 %v1778_v22 }
  0xd9   :  { %749 = vmatpush.msrb.mxu0 %v1781_v23 }
  0xdb   :  { %750 = vmatpush.msrb.mxu0 %v1784_v24 }
  0xdd   :  { %751 = vmatpush.msrb.mxu0 %v1787_v26 }
  0xdf   :  { %752 = vmatpush.msrb.mxu0 %v1790_v27 }
  0xe1   :  { %753 = vmatpush.msrb.mxu0 %v1793_v28 }
  0xe3   :  { %754 = vmatpush.msrb.mxu0 %v1796_v30 }
  0xe5   :  { %755 = vmatpush.msrb.mxu0 %v1799_v31 }
 0x103   :  { %v205_v3 = vpop.f32.mrf.mxu0  ;;  %v246_v15 = vpop.f32.mrf.mxu1 }
 0x104   :  { %v206_v60 = vadd.f32 %v205_v3, %v182_v34 }
 0x106   :  { %v447_v57 = vadd.f32 %v404_v8, %v206_v60  ;;  %v424_v60 = vpop.f32.mrf.mxu3 }
 0x10a   :  { %v2020_v44 = vpop.f32.mrf.mxu2 }
 0x10b   :  { %v208_v48 = vpop.f32.mrf.mxu0  ;;  %v249_v50 = vpop.f32.mrf.mxu1 }
 0x10c   :  { %v2022_v51 = vadd.f32 %v208_v48, %v182_v34  ;;  %v2025_v55 = vadd.f32 %v249_v50, %v2018_v35  ;;  %v1359_v48 = vmul.f32 -1.442695, %v447_v57 }
 0x10e   :  { %2497 = vst [vmem:[#allocation21_spill] sm:$0xff] %v2022_v51  ;;  %1391 = vpow2.f32 %v1359_v48 }
 0x10f   :  { %2498 = vst [vmem:[#allocation22_spill] sm:$0xff] %v2025_v55  ;;  %v247_v55 = vadd.f32 %v246_v15, %v2018_v35 }
 0x111   :  { %v448_v8 = vadd.f32 %v424_v60, %v247_v55 }
 0x112   :  { %v290_v10 = vpop.f32.mrf.mxu2 }
 0x113   :  { %v2030_v13 = vadd.f32 %v290_v10, %v2027_v0  ;;  %v211_v14 = vpop.f32.mrf.mxu0  ;;  %v252_v31 = vpop.f32.mrf.mxu1 }
 0x114   :  { %v2032_v7 = vadd.f32 %v211_v14, %v182_v34  ;;  %v2035_v30 = vadd.f32 %v252_v31, %v2018_v35  ;;  %v1392_v14 = vpop.eup %1391 }
 0x115   :  { %2499 = vst [vmem:[#allocation23_spill] sm:$0xff] %v2030_v13  ;;  %v455_v15 = vadd.f32 1.0, %v1392_v14 }
 0x116   :  { %2500 = vst [vmem:[#allocation24_spill] sm:$0xff] %v2032_v7 }
 0x117   :  { %2501 = vst [vmem:[#allocation25_spill] sm:$0xff] %v2035_v30  ;;  %v468_v1 = vand.u32 2147483648, %v455_v15  ;;  %vm462_vm9 = vweird.f32 %v455_v15 }
 0x11a   :  { %v293_v51 = vpop.f32.mrf.mxu2 }
 0x11b   :  { %v2038_v50 = vadd.f32 %v293_v51, %v2027_v0  ;;  %v214_v3 = vpop.f32.mrf.mxu0  ;;  %v255_v32 = vpop.f32.mrf.mxu1 }
 0x11c   :  { %v2041_v10 = vadd.f32 %v214_v3, %v182_v34  ;;  %v2044_v13 = vadd.f32 %v255_v32, %v2018_v35 }
 0x11d   :  { %2502 = vst [vmem:[#allocation26_spill] sm:$0xff] %v2038_v50  ;;  %v1360_v50 = vmul.f32 -1.442695, %v448_v8 }
 0x11e   :  { %2503 = vst [vmem:[#allocation27_spill] sm:$0xff] %v2041_v10 }
 0x11f   :  { %2504 = vst [vmem:[#allocation28_spill] sm:$0xff] %v2044_v13  ;;  %1393 = vpow2.f32 %v1360_v50 }
 0x120   :  { %1395 = vrcp.f32 %v455_v15 }
 0x122   :  { %v296_v31 = vpop.f32.mrf.mxu2 }
 0x123   :  { %v2047_v57 = vadd.f32 %v296_v31, %v2027_v0  ;;  %v217_v30 = vpop.f32.mrf.mxu0  ;;  %v258_v51 = vpop.f32.mrf.mxu1 }
 0x124   :  { %v2049_v7 = vadd.f32 %v217_v30, %v182_v34  ;;  %v2052_v48 = vadd.f32 %v258_v51, %v2018_v35 }
 0x125   :  { %2505 = vst [vmem:[#allocation29_spill] sm:$0xff] %v2047_v57  ;;  %v1394_v8 = vpop.eup %1393 }
 0x126   :  { %2506 = vst [vmem:[#allocation30_spill] sm:$0xff] %v2049_v7  ;;  %v1396_v30 = vpop.eup %1395  ;;  %v456_v7 = vadd.f32 1.0, %v1394_v8 }
 0x127   :  { %2507 = vst [vmem:[#allocation31_spill] sm:$0xff] %v2052_v48  ;;  %v458_v51 = vmul.f32 %v1396_v30, %v455_v15  ;;  %vm463_vm8 = vweird.f32 %v1396_v30 }
 0x128   :  { %1397 = vrcp.f32 %v456_v7  ;;  %vm464_vm10 = vmor %vm462_vm9, %vm463_vm8  ;;  %vm477_vm13 = vweird.f32 %v456_v7  ;;  %v481_v28 = vand.u32 2147483647, %v456_v7 }
 0x12a   :  { %v299_v3 = vpop.f32.mrf.mxu2  ;;  %vm482_vm15 = vcmp.eq.f32.partialorder %v481_v28, 8.507059e+37 }
 0x12b   :  { %v2055_v32 = vadd.f32 %v299_v3, %v2027_v0  ;;  %v220_v55 = vpop.f32.mrf.mxu0  ;;  %v261_v60 = vpop.f32.mrf.mxu1 }
 0x12c   :  { %v2057_v10 = vadd.f32 %v220_v55, %v182_v34  ;;  %v2060_v31 = vadd.f32 %v261_v60, %v2018_v35  ;;  %v459_v55 = vsub.f32 1.0, %v458_v51 }
 0x12d   :  { %2508 = vst [vmem:[#allocation32_spill] sm:$0xff] %v2055_v32 }
 0x12e   :  { %2509 = vst [vmem:[#allocation33_spill] sm:$0xff] %v2057_v10  ;;  %v460_v60 = vmul.f32 %v1396_v30, %v459_v55  ;;  %v1398_v32 = vpop.eup %1397 }
 0x12f   :  { %2510 = vst [vmem:[#allocation34_spill] sm:$0xff] %v2060_v31  ;;  %vm478_vm12 = vweird.f32 %v1398_v32 }
 0x130   :  { %vm479_vm14 = vmor %vm477_vm13, %vm478_vm12 }
 0x132   :  { %v302_v57 = vpop.f32.mrf.mxu2 }
 0x133   :  { %v2063_v14 = vadd.f32 %v302_v57, %v2027_v0  ;;  %v223_v50 = vpop.f32.mrf.mxu0  ;;  %v264_v48 = vpop.f32.mrf.mxu1  ;;  %v461_v57 = vadd.f32 %v1396_v30, %v460_v60  ;;  %v288_v60 = vadd.f32 %v2020_v44, %v2027_v0 }
 0x134   :  { %v2065_v13 = vadd.f32 %v223_v50, %v182_v34  ;;  %v2068_v3 = vadd.f32 %v264_v48, %v2018_v35  ;;  %v466_v50 = vand.u32 2147483647, %v455_v15  ;;  %v2078_v48 = vld [vmem:[%s2472_s4] ss:$0 sm:$0xff]  ;;  %v469_v35 = vor.u32 1.1754944e-38, %v468_v1 }
 0x135   :  { %2511 = vst [vmem:[#allocation35_spill] sm:$0xff] %v2063_v14  ;;  %v473_v14 = vmul.f32 %v1398_v32, %v456_v7  ;;  %v465_v51 = vsel %vm464_vm10, %v1396_v30, %v461_v57 }
 0x136   :  { %2512 = vst [vmem:[#allocation36_spill] sm:$0xff] %v2065_v13  ;;  %vm467_vm11 = vcmp.eq.f32.partialorder %v466_v50, 8.507059e+37  ;;  %v483_v13 = vand.u32 2147483648, %v456_v7 }
 0x137   :  { %2513 = vst [vmem:[#allocation37_spill] sm:$0xff] %v2068_v3  ;;  %v474_v55 = vsub.f32 1.0, %v473_v14 }
 0x138   :  { %v484_v1 = vor.u32 1.1754944e-38, %v483_v13 }
 0x13a   :  { %v305_v10 = vpop.f32.mrf.mxu2 }
 0x13b   :  { %v2071_v31 = vadd.f32 %v305_v10, %v2027_v0  ;;  %v226_v8 = vpop.f32.mrf.mxu0 }
 0x13c   :  { %v2073_v53 = vadd.f32 %v226_v8, %v182_v34  ;;  %v470_v8 = vsel %vm467_vm11, %v469_v35, %v465_v51 }
 0x13d   :  { %2514 = vst [vmem:[#allocation38_spill] sm:$0xff] %v2071_v31  ;;  %v475_v31 = vmul.f32 %v1398_v32, %v474_v55 }
 0x13e   :  { %2515 = vst [vmem:[#allocation39_spill] sm:$0xff] %v2073_v53 }
 0x13f   :  { %v476_v3 = vadd.f32 %v1398_v32, %v475_v31 }
 0x141   :  { %v480_v30 = vsel %vm479_vm14, %v1398_v32, %v476_v3 }
 0x142   :  { %v485_v50 = vsel %vm482_vm15, %v484_v1, %v480_v30 }
 0x143   :  { %v444_v10 = vpop.f32.mrf.mxu0 }
 0x144   :  { %v490_v34 = vadd.f32 %v2078_v48, %v444_v10 }
 0x146   :  { %v491_v53 = vmul.f32 %v490_v34, %v470_v8 }
 0x148   :  { %v492_v15 = vadd.f32 %v491_v53, %v288_v60  ;;  %v2524_v53 = vld [vmem:[#allocation22_spill] sm:$0xff] }
 0x14a   :  { %1399 = vtanh.f32 %v492_v15 }
 0x150   :  { %v1400_v14 = vpop.eup %1399 }
 0x151   :  { %v494_v57 = vsub.f32 0.0, %v1400_v14 }
 0x153   :  { %v495_v35 = vmul.f32 %v494_v57, %v485_v50 }
 0x155   :  { %v2083_v51 = vadd.f32 %v1400_v14, %v495_v35 }
 0x157   :  { %516 = vmatmul.f32.vlgmr.msrb.gmra.mxu1 %v2083_v51  ;;  %536 = vmatmul.f32.vlgmr.msrb.gmra.mxu2 %v2083_v51 }
 0x158   :  { %556 = vmatmul.f32.vlgmr.msra.gmra.mxu3 %v2083_v51  ;;  %760 = vmatpush.msrb.mxu1 %v1805_v36 }
 0x159   :  { %830 = vmatpush.msrb.mxu2 %v1691_v4  ;;  %850 = vmatpush.msra.mxu3 %v1753_v59  ;;  %v2516_v4 = vld [vmem:[#allocation15_spill] sm:$0xff] }
 0x15a   :  { %761 = vmatpush.msrb.mxu1 %v1807_v38 }
 0x15b   :  { %831 = vmatpush.msrb.mxu2 %v1693_v5  ;;  %851 = vmatpush.msra.mxu3 %v1756_v62  ;;  %v2517_v5 = vld [vmem:[#allocation18_spill] sm:$0xff] }
 0x15c   :  { %762 = vmatpush.msrb.mxu1 %v1821_v39 }
 0x15d   :  { %832 = vmatpush.msrb.mxu2 %v1696_v6  ;;  %852 = vmatpush.msra.mxu3 %v1759_v2  ;;  %v2518_v6 = vld [vmem:[#allocation13_spill] sm:$0xff] }
 0x15e   :  { %763 = vmatpush.msrb.mxu1 %v1823_v40 }
 0x15f   :  { %833 = vmatpush.msrb.mxu2 %v1706_v9  ;;  %853 = vmatpush.msra.mxu3 %v1763_v11  ;;  %v2519_v9 = vld [vmem:[#allocation16_spill] sm:$0xff] }
 0x160   :  { %764 = vmatpush.msrb.mxu1 %v1837_v42 }
 0x161   :  { %834 = vmatpush.msrb.mxu2 %v1711_v12  ;;  %854 = vmatpush.msra.mxu3 %v1766_v16  ;;  %v2520_v12 = vld [vmem:[#allocation19_spill] sm:$0xff] }
 0x162   :  { %765 = vmatpush.msrb.mxu1 %v1839_v43 }
 0x163   :  { %835 = vmatpush.msrb.mxu2 %v1714_v17  ;;  %855 = vmatpush.msra.mxu3 %v1769_v18  ;;  %v2521_v17 = vld [vmem:[#allocation14_spill] sm:$0xff] }
 0x164   :  { %766 = vmatpush.msrb.mxu1 %v1853_v46 }
 0x165   :  { %836 = vmatpush.msrb.mxu2 %v1717_v21  ;;  %856 = vmatpush.msra.mxu3 %v1772_v19  ;;  %v2522_v21 = vld [vmem:[#allocation17_spill] sm:$0xff] }
 0x166   :  { %767 = vmatpush.msrb.mxu1 %v1855_v47 }
 0x167   :  { %837 = vmatpush.msrb.mxu2 %v1726_v25  ;;  %857 = vmatpush.msra.mxu3 %v1775_v20  ;;  %v2136_v25 = vpop.f32.mrf.mxu1 }
 0x168   :  { %768 = vmatpush.msrb.mxu1 %v1874_v52 }
 0x169   :  { %838 = vmatpush.msrb.mxu2 %v1729_v29  ;;  %858 = vmatpush.msra.mxu3 %v1778_v22  ;;  %v2138_v29 = vpop.f32.mrf.mxu2 }
 0x16a   :  { %769 = vmatpush.msrb.mxu1 %v1876_v54 }
 0x16b   :  { %839 = vmatpush.msrb.mxu2 %v1732_v33  ;;  %859 = vmatpush.msra.mxu3 %v1781_v23 }
 0x16c   :  { %770 = vmatpush.msrb.mxu1 %v1893_v56 }
 0x16d   :  { %840 = vmatpush.msrb.mxu2 %v1735_v37  ;;  %860 = vmatpush.msra.mxu3 %v1784_v24  ;;  %v2523_v37 = vld [vmem:[#allocation21_spill] sm:$0xff] }
 0x16e   :  { %771 = vmatpush.msrb.mxu1 %v1895_v58 }
 0x16f   :  { %841 = vmatpush.msrb.mxu2 %v1738_v41  ;;  %861 = vmatpush.msra.mxu3 %v1787_v26 }
 0x170   :  { %772 = vmatpush.msrb.mxu1 %v1912_v61 }
 0x171   :  { %842 = vmatpush.msrb.mxu2 %v1741_v45  ;;  %862 = vmatpush.msra.mxu3 %v1790_v27 }
 0x172   :  { %773 = vmatpush.msrb.mxu1 %v1914_v63 }
 0x173   :  { %843 = vmatpush.msrb.mxu2 %v1744_v49  ;;  %863 = vmatpush.msra.mxu3 %v2516_v4 }
 0x174   :  { %774 = vmatpush.msrb.mxu1 %v2517_v5 }
 0x175   :  { %844 = vmatpush.msrb.mxu2 %v2518_v6  ;;  %864 = vmatpush.msra.mxu3 %v2519_v9 }
 0x176   :  { %775 = vmatpush.msrb.mxu1 %v2520_v12 }
 0x177   :  { %845 = vmatpush.msrb.mxu2 %v2521_v17  ;;  %865 = vmatpush.msra.mxu3 %v2522_v21 }
 0x1d4   :  { %v517_v33 = vpop.f32.mrf.mxu1 }
 0x1d5   :  { %v560_v41 = vadd.f32 %v517_v33, %v2523_v37 }
 0x1d7   :  { %v1361_v45 = vmul.f32 -1.442695, %v560_v41  ;;  %v2525_v41 = vld [vmem:[#allocation23_spill] sm:$0xff] }
 0x1d9   :  { %1401 = vpow2.f32 %v1361_v45 }
 0x1da   :  { %v537_v49 = vpop.f32.mrf.mxu2 }
 0x1db   :  { %v561_v28 = vadd.f32 %v537_v49, %v2524_v53  ;;  %v557_v30 = vpop.f32.mrf.mxu3 }
 0x1dc   :  { %v600_v6 = vadd.f32 %v2078_v48, %v557_v30 }
 0x1dd   :  { %v1362_v7 = vmul.f32 -1.442695, %v561_v28 }
 0x1df   :  { %v1402_v44 = vpop.eup %1401  ;;  %1403 = vpow2.f32 %v1362_v7 }
 0x1e0   :  { %v568_v13 = vadd.f32 1.0, %v1402_v44 }
 0x1e2   :  { %1405 = vrcp.f32 %v568_v13  ;;  %v581_v34 = vand.u32 2147483648, %v568_v13  ;;  %v579_v60 = vand.u32 2147483647, %v568_v13  ;;  %vm575_vm1 = vweird.f32 %v568_v13 }
 0x1e4   :  { %v582_v57 = vor.u32 1.1754944e-38, %v581_v34  ;;  %vm580_vm3 = vcmp.eq.f32.partialorder %v579_v60, 8.507059e+37  ;;  %v2161_v34 = vld [vmem:[#allocation6 + $0x138] sm:$0xff]  ;;  %v2527_v60 = vld [vmem:[#allocation25_spill] sm:$0xff] }
 0x1e5   :  { %v1404_v32 = vpop.eup %1403 }
 0x1e6   :  { %v569_v31 = vadd.f32 1.0, %v1404_v32 }
 0x1e8   :  { %v1406_v3 = vpop.eup %1405  ;;  %1407 = vrcp.f32 %v569_v31  ;;  %v596_v53 = vand.u32 2147483648, %v569_v31  ;;  %vm590_vm5 = vweird.f32 %v569_v31  ;;  %v594_v28 = vand.u32 2147483647, %v569_v31 }
 0x1e9   :  { %v571_v55 = vmul.f32 %v1406_v3, %v568_v13  ;;  %vm576_vm0 = vweird.f32 %v1406_v3 }
 0x1ea   :  { %vm577_vm2 = vmor %vm575_vm1, %vm576_vm0  ;;  %v597_v13 = vor.u32 1.1754944e-38, %v596_v53  ;;  %vm595_vm7 = vcmp.eq.f32.partialorder %v594_v28, 8.507059e+37 }
 0x1eb   :  { %v572_v10 = vsub.f32 1.0, %v571_v55 }
 0x1ed   :  { %v573_v8 = vmul.f32 %v1406_v3, %v572_v10 }
 0x1ee   :  { %v1408_v15 = vpop.eup %1407 }
 0x1ef   :  { %v586_v14 = vmul.f32 %v1408_v15, %v569_v31  ;;  %v574_v1 = vadd.f32 %v1406_v3, %v573_v8  ;;  %vm591_vm4 = vweird.f32 %v1408_v15  ;;  %v2151_v31 = vld [vmem:[#allocation6 + $0x168] sm:$0xff]  ;;  %v2526_v8 = vld [vmem:[#allocation24_spill] sm:$0xff] }
 0x1f0   :  { %vm592_vm6 = vmor %vm590_vm5, %vm591_vm4 }
 0x1f1   :  { %v587_v50 = vsub.f32 1.0, %v586_v14  ;;  %v578_v35 = vsel %vm577_vm2, %v1406_v3, %v574_v1 }
 0x1f2   :  { %v583_v17 = vsel %vm580_vm3, %v582_v57, %v578_v35 }
 0x1f3   :  { %v601_v33 = vmul.f32 %v600_v6, %v583_v17  ;;  %v588_v37 = vmul.f32 %v1408_v15, %v587_v50 }
 0x1f5   :  { %v602_v45 = vadd.f32 %v601_v33, %v2525_v41  ;;  %v589_v49 = vadd.f32 %v1408_v15, %v588_v37 }
 0x1f7   :  { %1409 = vtanh.f32 %v602_v45  ;;  %v593_v7 = vsel %vm592_vm6, %v1408_v15, %v589_v49 }
 0x1f8   :  { %v598_v3 = vsel %vm595_vm7, %v597_v13, %v593_v7 }
 0x1fd   :  { %v1410_v44 = vpop.eup %1409 }
 0x1fe   :  { %v604_v32 = vsub.f32 %v2083_v51, %v1410_v44  ;;  %v2156_v51 = vld [vmem:[#allocation6 + $0x150] sm:$0xff] }
 0x200   :  { %v605_v55 = vmul.f32 %v604_v32, %v598_v3 }
 0x202   :  { %v2145_v10 = vadd.f32 %v1410_v44, %v605_v55 }
 0x204   :  { %626 = vmatmul.f32.vlgmr.msra.gmra.mxu0 %v2145_v10  ;;  %646 = vmatmul.f32.vlgmr.msra.gmra.mxu1 %v2145_v10 }
 0x205   :  { %666 = vmatmul.f32.vlgmr.msra.gmra.mxu2 %v2145_v10  ;;  %870 = vmatpush.msra.mxu0 %v1805_v36  ;;  %v2166_v36 = vld [vmem:[#allocation6 + $0x120] sm:$0xff] }
 0x206   :  { %940 = vmatpush.msra.mxu1 %v2151_v31  ;;  %960 = vmatpush.msra.mxu2 %v1753_v59  ;;  %v2171_v59 = vld [vmem:[#allocation6 + $0x108] sm:$0xff] }
 0x207   :  { %871 = vmatpush.msra.mxu0 %v1807_v38 }
 0x208   :  { %941 = vmatpush.msra.mxu1 %v2156_v51  ;;  %961 = vmatpush.msra.mxu2 %v1756_v62  ;;  %v2176_v62 = vld [vmem:[#allocation6 + $0xf0] sm:$0xff] }
 0x209   :  { %872 = vmatpush.msra.mxu0 %v1821_v39 }
 0x20a   :  { %942 = vmatpush.msra.mxu1 %v2161_v34  ;;  %962 = vmatpush.msra.mxu2 %v1759_v2  ;;  %v2181_v2 = vld [vmem:[#allocation6 + $0xd8] sm:$0xff] }
 0x20b   :  { %873 = vmatpush.msra.mxu0 %v1823_v40 }
 0x20c   :  { %943 = vmatpush.msra.mxu1 %v2166_v36  ;;  %963 = vmatpush.msra.mxu2 %v1763_v11  ;;  %v2186_v11 = vld [vmem:[#allocation6 + $0xc0] sm:$0xff] }
 0x20d   :  { %874 = vmatpush.msra.mxu0 %v1837_v42 }
 0x20e   :  { %944 = vmatpush.msra.mxu1 %v2171_v59  ;;  %964 = vmatpush.msra.mxu2 %v1766_v16  ;;  %v2191_v16 = vld [vmem:[#allocation6 + $0xa8] sm:$0xff] }
 0x20f   :  { %875 = vmatpush.msra.mxu0 %v1839_v43 }
 0x210   :  { %945 = vmatpush.msra.mxu1 %v2176_v62  ;;  %965 = vmatpush.msra.mxu2 %v1769_v18  ;;  %v2196_v18 = vld [vmem:[#allocation6 + $0x90] sm:$0xff] }
 0x211   :  { %876 = vmatpush.msra.mxu0 %v1853_v46 }
 0x212   :  { %946 = vmatpush.msra.mxu1 %v2181_v2  ;;  %966 = vmatpush.msra.mxu2 %v1772_v19  ;;  %v2201_v19 = vld [vmem:[#allocation6 + $0x78] sm:$0xff] }
 0x213   :  { %877 = vmatpush.msra.mxu0 %v1855_v47 }
 0x214   :  { %947 = vmatpush.msra.mxu1 %v2186_v11  ;;  %967 = vmatpush.msra.mxu2 %v1775_v20  ;;  %v2206_v20 = vld [vmem:[#allocation6 + $0x60] sm:$0xff] }
 0x215   :  { %878 = vmatpush.msra.mxu0 %v1874_v52 }
 0x216   :  { %948 = vmatpush.msra.mxu1 %v2191_v16  ;;  %968 = vmatpush.msra.mxu2 %v1778_v22  ;;  %v2211_v22 = vld [vmem:[#allocation6 + $0x48] sm:$0xff] }
 0x217   :  { %879 = vmatpush.msra.mxu0 %v1876_v54 }
 0x218   :  { %949 = vmatpush.msra.mxu1 %v2196_v18  ;;  %969 = vmatpush.msra.mxu2 %v1781_v23  ;;  %v2216_v23 = vld [vmem:[#allocation6 + $0x30] sm:$0xff] }
 0x219   :  { %880 = vmatpush.msra.mxu0 %v1893_v56 }
 0x21a   :  { %950 = vmatpush.msra.mxu1 %v2201_v19  ;;  %970 = vmatpush.msra.mxu2 %v1784_v24  ;;  %v2221_v24 = vld [vmem:[#allocation6 + $0x18] sm:$0xff] }
 0x21b   :  { %881 = vmatpush.msra.mxu0 %v1895_v58 }
 0x21c   :  { %951 = vmatpush.msra.mxu1 %v2206_v20  ;;  %971 = vmatpush.msra.mxu2 %v1787_v26  ;;  %v2226_v26 = vld [vmem:[#allocation6] sm:$0xff] }
 0x21d   :  { %882 = vmatpush.msra.mxu0 %v1912_v61 }
 0x21e   :  { %952 = vmatpush.msra.mxu1 %v2211_v22  ;;  %972 = vmatpush.msra.mxu2 %v1790_v27 }
 0x21f   :  { %883 = vmatpush.msra.mxu0 %v1914_v63 }
 0x220   :  { %953 = vmatpush.msra.mxu1 %v2216_v23  ;;  %973 = vmatpush.msra.mxu2 %v2516_v4 }
 0x221   :  { %884 = vmatpush.msra.mxu0 %v2517_v5 }
 0x222   :  { %954 = vmatpush.msra.mxu1 %v2221_v24  ;;  %974 = vmatpush.msra.mxu2 %v2519_v9 }
 0x223   :  { %885 = vmatpush.msra.mxu0 %v2520_v12 }
 0x224   :  { %955 = vmatpush.msra.mxu1 %v2226_v26  ;;  %975 = vmatpush.msra.mxu2 %v2522_v21 }
 0x281   :  { %v627_v27 = vpop.f32.mrf.mxu0  ;;  %v647_v38 = vpop.f32.mrf.mxu1 }
 0x282   :  { %v670_v4 = vadd.f32 %v627_v27, %v2526_v8  ;;  %v671_v15 = vadd.f32 %v647_v38, %v2527_v60  ;;  %v2528_v27 = vld [vmem:[#allocation26_spill] sm:$0xff] }
 0x284   :  { %v1363_v30 = vmul.f32 -1.442695, %v670_v4  ;;  %v1364_v14 = vmul.f32 -1.442695, %v671_v15 }
 0x286   :  { %1411 = vpow2.f32 %v1363_v30 }
 0x287   :  { %1413 = vpow2.f32 %v1364_v14 }
 0x288   :  { %v667_v49 = vpop.f32.mrf.mxu2 }
 0x289   :  { %v710_v13 = vadd.f32 %v2078_v48, %v667_v49 }
 0x28c   :  { %v1412_v1 = vpop.eup %1411 }
 0x28d   :  { %v1414_v9 = vpop.eup %1413  ;;  %v678_v57 = vadd.f32 1.0, %v1412_v1 }
 0x28e   :  { %v679_v50 = vadd.f32 1.0, %v1414_v9 }
 0x28f   :  { %1415 = vrcp.f32 %v678_v57  ;;  %v691_v37 = vand.u32 2147483648, %v678_v57  ;;  %v689_v45 = vand.u32 2147483647, %v678_v57  ;;  %vm685_vm9 = vweird.f32 %v678_v57 }
 0x290   :  { %1417 = vrcp.f32 %v679_v50  ;;  %v706_v4 = vand.u32 2147483648, %v679_v50  ;;  %vm700_vm13 = vweird.f32 %v679_v50  ;;  %v704_v60 = vand.u32 2147483647, %v679_v50 }
 0x291   :  { %v692_v7 = vor.u32 1.1754944e-38, %v691_v37  ;;  %vm690_vm11 = vcmp.eq.f32.partialorder %v689_v45, 8.507059e+37  ;;  %v2266_v37 = vld [vmem:[#allocation6 + $0x110] sm:$0xff] }
 0x292   :  { %v707_v14 = vor.u32 1.1754944e-38, %v706_v4  ;;  %vm705_vm15 = vcmp.eq.f32.partialorder %v704_v60, 8.507059e+37 }
 0x295   :  { %v1416_v35 = vpop.eup %1415 }
 0x296   :  { %v1418_v6 = vpop.eup %1417  ;;  %v681_v17 = vmul.f32 %v1416_v35, %v678_v57  ;;  %vm686_vm8 = vweird.f32 %v1416_v35 }
 0x297   :  { %v696_v33 = vmul.f32 %v1418_v6, %v679_v50  ;;  %vm687_vm10 = vmor %vm685_vm9, %vm686_vm8  ;;  %vm701_vm12 = vweird.f32 %v1418_v6  ;;  %v2244_v50 = vld [vmem:[#allocation6 + $0x170] sm:$0xff] }
 0x298   :  { %v682_v21 = vsub.f32 1.0, %v681_v17  ;;  %vm702_vm14 = vmor %vm700_vm13, %vm701_vm12  ;;  %v2240_v17 = vld [vmem:[#allocation6 + $0x178] sm:$0xff] }
 0x299   :  { %v697_v28 = vsub.f32 1.0, %v696_v33  ;;  %v2261_v33 = vld [vmem:[#allocation6 + $0x128] sm:$0xff] }
 0x29a   :  { %v683_v41 = vmul.f32 %v1416_v35, %v682_v21  ;;  %v2256_v21 = vld [vmem:[#allocation6 + $0x140] sm:$0xff] }
 0x29b   :  { %v698_v55 = vmul.f32 %v1418_v6, %v697_v28 }
 0x29c   :  { %v684_v53 = vadd.f32 %v1416_v35, %v683_v41  ;;  %v2529_v41 = vld [vmem:[#allocation28_spill] sm:$0xff] }
 0x29d   :  { %v699_v8 = vadd.f32 %v1418_v6, %v698_v55 }
 0x29e   :  { %v688_v44 = vsel %vm687_vm10, %v1416_v35, %v684_v53 }
 0x29f   :  { %v693_v32 = vsel %vm690_vm11, %v692_v7, %v688_v44  ;;  %v703_v15 = vsel %vm702_vm14, %v1418_v6, %v699_v8  ;;  %v2251_v6 = vld [vmem:[#allocation6 + $0x158] sm:$0xff] }
 0x2a0   :  { %v711_v3 = vmul.f32 %v710_v13, %v693_v32  ;;  %v708_v9 = vsel %vm705_vm15, %v707_v14, %v703_v15 }
 0x2a2   :  { %v712_v38 = vadd.f32 %v711_v3, %v2528_v27 }
 0x2a4   :  { %1419 = vtanh.f32 %v712_v38 }
 0x2aa   :  { %v1420_v30 = vpop.eup %1419 }
 0x2ab   :  { %v714_v1 = vsub.f32 %v2145_v10, %v1420_v30  ;;  %v2247_v10 = vld [vmem:[#allocation6 + $0x160] sm:$0xff] }
 0x2ad   :  { %v715_v57 = vmul.f32 %v714_v1, %v708_v9 }
 0x2af   :  { %v2235_v35 = vadd.f32 %v1420_v30, %v715_v57 }
 0x2b1   :  { %736 = vmatmul.f32.vlgmr.msrb.gmra.mxu3 %v2235_v35  ;;  %756 = vmatmul.f32.vlgmr.msrb.gmra.mxu0 %v2235_v35 }
 0x2b2   :  { %776 = vmatmul.f32.vlgmr.msrb.gmra.mxu1 %v2235_v35  ;;  %980 = vmatpush.msrb.mxu3 %v2240_v17 }
 0x2b3   :  { %1050 = vmatpush.msrb.mxu0 %v2151_v31  ;;  %1070 = vmatpush.msrb.mxu1 %v2244_v50 }
 0x2b4   :  { %981 = vmatpush.msrb.mxu3 %v2247_v10 }
 0x2b5   :  { %1051 = vmatpush.msrb.mxu0 %v2156_v51  ;;  %1071 = vmatpush.msrb.mxu1 %v2251_v6 }
 0x2b6   :  { %982 = vmatpush.msrb.mxu3 %v1821_v39  ;;  %v2271_v39 = vld [vmem:[#allocation6 + $0xf8] sm:$0xff] }
 0x2b7   :  { %1052 = vmatpush.msrb.mxu0 %v2161_v34  ;;  %1072 = vmatpush.msrb.mxu1 %v2256_v21 }
 0x2b8   :  { %983 = vmatpush.msrb.mxu3 %v1823_v40  ;;  %v2276_v40 = vld [vmem:[#allocation6 + $0xe0] sm:$0xff] }
 0x2b9   :  { %1053 = vmatpush.msrb.mxu0 %v2166_v36  ;;  %1073 = vmatpush.msrb.mxu1 %v2261_v33 }
 0x2ba   :  { %984 = vmatpush.msrb.mxu3 %v1837_v42  ;;  %v2281_v42 = vld [vmem:[#allocation6 + $0xc8] sm:$0xff] }
 0x2bb   :  { %1054 = vmatpush.msrb.mxu0 %v2171_v59  ;;  %1074 = vmatpush.msrb.mxu1 %v2266_v37 }
 0x2bc   :  { %985 = vmatpush.msrb.mxu3 %v1839_v43  ;;  %v2286_v43 = vld [vmem:[#allocation6 + $0xb0] sm:$0xff] }
 0x2bd   :  { %1055 = vmatpush.msrb.mxu0 %v2176_v62  ;;  %1075 = vmatpush.msrb.mxu1 %v2271_v39 }
 0x2be   :  { %986 = vmatpush.msrb.mxu3 %v1853_v46  ;;  %v2291_v46 = vld [vmem:[#allocation6 + $0x98] sm:$0xff] }
 0x2bf   :  { %1056 = vmatpush.msrb.mxu0 %v2181_v2  ;;  %1076 = vmatpush.msrb.mxu1 %v2276_v40 }
 0x2c0   :  { %987 = vmatpush.msrb.mxu3 %v1855_v47  ;;  %v2296_v47 = vld [vmem:[#allocation6 + $0x80] sm:$0xff] }
 0x2c1   :  { %1057 = vmatpush.msrb.mxu0 %v2186_v11  ;;  %1077 = vmatpush.msrb.mxu1 %v2281_v42 }
 0x2c2   :  { %988 = vmatpush.msrb.mxu3 %v1874_v52  ;;  %v2301_v52 = vld [vmem:[#allocation6 + $0x68] sm:$0xff] }
 0x2c3   :  { %1058 = vmatpush.msrb.mxu0 %v2191_v16  ;;  %1078 = vmatpush.msrb.mxu1 %v2286_v43 }
 0x2c4   :  { %989 = vmatpush.msrb.mxu3 %v1876_v54  ;;  %v2306_v54 = vld [vmem:[#allocation6 + $0x50] sm:$0xff] }
 0x2c5   :  { %1059 = vmatpush.msrb.mxu0 %v2196_v18  ;;  %1079 = vmatpush.msrb.mxu1 %v2291_v46 }
 0x2c6   :  { %990 = vmatpush.msrb.mxu3 %v1893_v56  ;;  %v2311_v56 = vld [vmem:[#allocation6 + $0x38] sm:$0xff] }
 0x2c7   :  { %1060 = vmatpush.msrb.mxu0 %v2201_v19  ;;  %1080 = vmatpush.msrb.mxu1 %v2296_v47 }
 0x2c8   :  { %991 = vmatpush.msrb.mxu3 %v1895_v58  ;;  %v2316_v58 = vld [vmem:[#allocation6 + $0x20] sm:$0xff] }
 0x2c9   :  { %1061 = vmatpush.msrb.mxu0 %v2206_v20  ;;  %1081 = vmatpush.msrb.mxu1 %v2301_v52 }
 0x2ca   :  { %992 = vmatpush.msrb.mxu3 %v1912_v61  ;;  %v2321_v61 = vld [vmem:[#allocation6 + $0x8] sm:$0xff] }
 0x2cb   :  { %1062 = vmatpush.msrb.mxu0 %v2211_v22  ;;  %1082 = vmatpush.msrb.mxu1 %v2306_v54 }
 0x2cc   :  { %993 = vmatpush.msrb.mxu3 %v1914_v63 }
 0x2cd   :  { %1063 = vmatpush.msrb.mxu0 %v2216_v23  ;;  %1083 = vmatpush.msrb.mxu1 %v2311_v56 }
 0x2ce   :  { %994 = vmatpush.msrb.mxu3 %v2517_v5  ;;  %v2530_v5 = vld [vmem:[#allocation27_spill] sm:$0xff] }
 0x2cf   :  { %1064 = vmatpush.msrb.mxu0 %v2221_v24  ;;  %1084 = vmatpush.msrb.mxu1 %v2316_v58 }
 0x2d0   :  { %995 = vmatpush.msrb.mxu3 %v2520_v12 }
 0x2d1   :  { %1065 = vmatpush.msrb.mxu0 %v2226_v26  ;;  %1085 = vmatpush.msrb.mxu1 %v2321_v61 }
 0x32e   :  { %v757_v63 = vpop.f32.mrf.mxu0 }
 0x32f   :  { %v781_v45 = vadd.f32 %v757_v63, %v2529_v41  ;;  %v777_v30 = vpop.f32.mrf.mxu1 }
 0x330   :  { %v820_v57 = vadd.f32 %v2078_v48, %v777_v30 }
 0x331   :  { %v1366_v49 = vmul.f32 -1.442695, %v781_v45 }
 0x333   :  { %1421 = vpow2.f32 %v1366_v49 }
 0x334   :  { %v737_v53 = vpop.f32.mrf.mxu3 }
 0x335   :  { %v780_v28 = vadd.f32 %v737_v53, %v2530_v5  ;;  %v2531_v53 = vld [vmem:[#allocation29_spill] sm:$0xff] }
 0x337   :  { %v1365_v7 = vmul.f32 -1.442695, %v780_v28 }
 0x339   :  { %1423 = vpow2.f32 %v1365_v7  ;;  %v1422_v44 = vpop.eup %1421 }
 0x33a   :  { %v789_v32 = vadd.f32 1.0, %v1422_v44 }
 0x33c   :  { %v816_v7 = vand.u32 2147483648, %v789_v32  ;;  %vm810_vm5 = vweird.f32 %v789_v32  ;;  %v814_v44 = vand.u32 2147483647, %v789_v32 }
 0x33e   :  { %vm815_vm7 = vcmp.eq.f32.partialorder %v814_v44, 8.507059e+37 }
 0x33f   :  { %v1424_v13 = vpop.eup %1423 }
 0x340   :  { %v788_v12 = vadd.f32 1.0, %v1424_v13 }
 0x342   :  { %1425 = vrcp.f32 %v788_v12  ;;  %v801_v4 = vand.u32 2147483648, %v788_v12  ;;  %v799_v15 = vand.u32 2147483647, %v788_v12  ;;  %vm795_vm1 = vweird.f32 %v788_v12 }
 0x343   :  { %1427 = vrcp.f32 %v789_v32 }
 0x344   :  { %v802_v9 = vor.u32 1.1754944e-38, %v801_v4  ;;  %vm800_vm3 = vcmp.eq.f32.partialorder %v799_v15, 8.507059e+37 }
 0x348   :  { %v1426_v3 = vpop.eup %1425 }
 0x349   :  { %v1428_v55 = vpop.eup %1427  ;;  %v791_v27 = vmul.f32 %v1426_v3, %v788_v12  ;;  %vm796_vm0 = vweird.f32 %v1426_v3 }
 0x34a   :  { %v806_v8 = vmul.f32 %v1428_v55, %v789_v32  ;;  %vm797_vm2 = vmor %vm795_vm1, %vm796_vm0  ;;  %vm811_vm4 = vweird.f32 %v1428_v55  ;;  %v2345_v32 = vld [vmem:[#allocation6 + $0x130] sm:$0xff] }
 0x34b   :  { %v792_v38 = vsub.f32 1.0, %v791_v27  ;;  %vm812_vm6 = vmor %vm810_vm5, %vm811_vm4  ;;  %v817_v27 = vor.u32 1.1754944e-38, %v816_v7 }
 0x34c   :  { %v807_v1 = vsub.f32 1.0, %v806_v8 }
 0x34d   :  { %v793_v60 = vmul.f32 %v1426_v3, %v792_v38 }
 0x34e   :  { %v808_v49 = vmul.f32 %v1428_v55, %v807_v1 }
 0x34f   :  { %v794_v14 = vadd.f32 %v1426_v3, %v793_v60 }
 0x350   :  { %v809_v28 = vadd.f32 %v1428_v55, %v808_v49 }
 0x351   :  { %v798_v63 = vsel %vm797_vm2, %v1426_v3, %v794_v14 }
 0x352   :  { %v803_v41 = vsel %vm800_vm3, %v802_v9, %v798_v63  ;;  %v813_v13 = vsel %vm812_vm6, %v1428_v55, %v809_v28 }
 0x353   :  { %v821_v45 = vmul.f32 %v820_v57, %v803_v41  ;;  %v818_v3 = vsel %vm815_vm7, %v817_v27, %v813_v13  ;;  %v2534_v41 = vld [vmem:[#allocation32_spill] sm:$0xff] }
 0x355   :  { %v822_v5 = vadd.f32 %v821_v45, %v2531_v53 }
 0x357   :  { %1429 = vtanh.f32 %v822_v5 }
 0x35d   :  { %v1430_v12 = vpop.eup %1429 }
 0x35e   :  { %v824_v38 = vsub.f32 %v2235_v35, %v1430_v12  ;;  %v2340_v35 = vld [vmem:[#allocation6 + $0x148] sm:$0xff] }
 0x360   :  { %v825_v8 = vmul.f32 %v824_v38, %v818_v3 }
 0x362   :  { %v2329_v4 = vadd.f32 %v1430_v12, %v825_v8 }
 0x364   :  { %846 = vmatmul.f32.vlgmr.msrb.gmra.mxu2 %v2329_v4  ;;  %866 = vmatmul.f32.vlgmr.msra.gmra.mxu3 %v2329_v4 }
 0x365   :  { %886 = vmatmul.f32.vlgmr.msra.gmra.mxu0 %v2329_v4  ;;  %1090 = vmatpush.msrb.mxu2 %v2240_v17 }
 0x366   :  { %1160 = vmatpush.msra.mxu3 %v2151_v31  ;;  %1180 = vmatpush.msra.mxu0 %v2244_v50  ;;  %v2350_v31 = vld [vmem:[#allocation6 + $0x118] sm:$0xff]  ;;  %v2532_v50 = vld [vmem:[#allocation30_spill] sm:$0xff] }
 0x367   :  { %1091 = vmatpush.msrb.mxu2 %v2247_v10 }
 0x368   :  { %1161 = vmatpush.msra.mxu3 %v2156_v51  ;;  %1181 = vmatpush.msra.mxu0 %v2251_v6  ;;  %v2355_v51 = vld [vmem:[#allocation6 + $0x100] sm:$0xff] }
 0x369   :  { %1092 = vmatpush.msrb.mxu2 %v2340_v35 }
 0x36a   :  { %1162 = vmatpush.msra.mxu3 %v2161_v34  ;;  %1182 = vmatpush.msra.mxu0 %v2256_v21  ;;  %v2360_v34 = vld [vmem:[#allocation6 + $0xe8] sm:$0xff]  ;;  %v2533_v21 = vld [vmem:[#allocation31_spill] sm:$0xff] }
 0x36b   :  { %1093 = vmatpush.msrb.mxu2 %v2345_v32 }
 0x36c   :  { %1163 = vmatpush.msra.mxu3 %v2166_v36  ;;  %1183 = vmatpush.msra.mxu0 %v2261_v33  ;;  %v2365_v36 = vld [vmem:[#allocation6 + $0xd0] sm:$0xff] }
 0x36d   :  { %1094 = vmatpush.msrb.mxu2 %v2350_v31 }
 0x36e   :  { %1164 = vmatpush.msra.mxu3 %v2171_v59  ;;  %1184 = vmatpush.msra.mxu0 %v2266_v37  ;;  %v2370_v59 = vld [vmem:[#allocation6 + $0xb8] sm:$0xff] }
 0x36f   :  { %1095 = vmatpush.msrb.mxu2 %v2355_v51 }
 0x370   :  { %1165 = vmatpush.msra.mxu3 %v2176_v62  ;;  %1185 = vmatpush.msra.mxu0 %v2271_v39  ;;  %v2375_v62 = vld [vmem:[#allocation6 + $0xa0] sm:$0xff] }
 0x371   :  { %1096 = vmatpush.msrb.mxu2 %v2360_v34 }
 0x372   :  { %1166 = vmatpush.msra.mxu3 %v2181_v2  ;;  %1186 = vmatpush.msra.mxu0 %v2276_v40  ;;  %v2380_v2 = vld [vmem:[#allocation6 + $0x88] sm:$0xff] }
 0x373   :  { %1097 = vmatpush.msrb.mxu2 %v2365_v36 }
 0x374   :  { %1167 = vmatpush.msra.mxu3 %v2186_v11  ;;  %1187 = vmatpush.msra.mxu0 %v2281_v42  ;;  %v2385_v11 = vld [vmem:[#allocation6 + $0x70] sm:$0xff] }
 0x375   :  { %1098 = vmatpush.msrb.mxu2 %v2370_v59 }
 0x376   :  { %1168 = vmatpush.msra.mxu3 %v2191_v16  ;;  %1188 = vmatpush.msra.mxu0 %v2286_v43  ;;  %v2390_v16 = vld [vmem:[#allocation6 + $0x58] sm:$0xff] }
 0x377   :  { %1099 = vmatpush.msrb.mxu2 %v2375_v62 }
 0x378   :  { %1169 = vmatpush.msra.mxu3 %v2196_v18  ;;  %1189 = vmatpush.msra.mxu0 %v2291_v46  ;;  %v2395_v18 = vld [vmem:[#allocation6 + $0x40] sm:$0xff] }
 0x379   :  { %1100 = vmatpush.msrb.mxu2 %v2380_v2 }
 0x37a   :  { %1170 = vmatpush.msra.mxu3 %v2201_v19  ;;  %1190 = vmatpush.msra.mxu0 %v2296_v47  ;;  %v2400_v19 = vld [vmem:[#allocation6 + $0x28] sm:$0xff] }
 0x37b   :  { %1101 = vmatpush.msrb.mxu2 %v2385_v11 }
 0x37c   :  { %1171 = vmatpush.msra.mxu3 %v2206_v20  ;;  %1191 = vmatpush.msra.mxu0 %v2301_v52  ;;  %v2405_v20 = vld [vmem:[#allocation6 + $0x10] sm:$0xff] }
 0x37d   :  { %1102 = vmatpush.msrb.mxu2 %v2390_v16 }
 0x37e   :  { %1172 = vmatpush.msra.mxu3 %v2211_v22  ;;  %1192 = vmatpush.msra.mxu0 %v2306_v54 }
 0x37f   :  { %1103 = vmatpush.msrb.mxu2 %v2395_v18 }
 0x380   :  { %1173 = vmatpush.msra.mxu3 %v2216_v23  ;;  %1193 = vmatpush.msra.mxu0 %v2311_v56 }
 0x381   :  { %1104 = vmatpush.msrb.mxu2 %v2400_v19 }
 0x382   :  { %1174 = vmatpush.msra.mxu3 %v2221_v24  ;;  %1194 = vmatpush.msra.mxu0 %v2316_v58 }
 0x383   :  { %1105 = vmatpush.msrb.mxu2 %v2405_v20 }
 0x384   :  { %1175 = vmatpush.msra.mxu3 %v2226_v26  ;;  %1195 = vmatpush.msra.mxu0 %v2321_v61 }
 0x3e2   :  { %v887_v55 = vpop.f32.mrf.mxu0 }
 0x3e3   :  { %v930_v14 = vadd.f32 %v2078_v48, %v887_v55 }
 0x3e7   :  { %v847_v22 = vpop.f32.mrf.mxu2  ;;  %v867_v23 = vpop.f32.mrf.mxu3 }
 0x3e8   :  { %v890_v6 = vadd.f32 %v847_v22, %v2532_v50  ;;  %v891_v33 = vadd.f32 %v867_v23, %v2533_v21 }
 0x3ea   :  { %v1367_v37 = vmul.f32 -1.442695, %v890_v6  ;;  %v1368_v39 = vmul.f32 -1.442695, %v891_v33 }
 0x3ec   :  { %1431 = vpow2.f32 %v1367_v37 }
 0x3ed   :  { %1433 = vpow2.f32 %v1368_v39 }
 0x3f2   :  { %v1432_v24 = vpop.eup %1431 }
 0x3f3   :  { %v1434_v40 = vpop.eup %1433  ;;  %v898_v42 = vadd.f32 1.0, %v1432_v24 }
 0x3f4   :  { %v899_v43 = vadd.f32 1.0, %v1434_v40 }
 0x3f5   :  { %1435 = vrcp.f32 %v898_v42  ;;  %v911_v54 = vand.u32 2147483648, %v898_v42  ;;  %v909_v61 = vand.u32 2147483647, %v898_v42  ;;  %vm905_vm9 = vweird.f32 %v898_v42 }
 0x3f6   :  { %1437 = vrcp.f32 %v899_v43  ;;  %v926_v53 = vand.u32 2147483648, %v899_v43  ;;  %vm920_vm13 = vweird.f32 %v899_v43  ;;  %v924_v5 = vand.u32 2147483647, %v899_v43 }
 0x3f7   :  { %v912_v15 = vor.u32 1.1754944e-38, %v911_v54  ;;  %vm910_vm11 = vcmp.eq.f32.partialorder %v909_v61, 8.507059e+37 }
 0x3f8   :  { %v927_v44 = vor.u32 1.1754944e-38, %v926_v53  ;;  %vm925_vm15 = vcmp.eq.f32.partialorder %v924_v5, 8.507059e+37 }
 0x3fb   :  { %v1436_v46 = vpop.eup %1435 }
 0x3fc   :  { %v1438_v26 = vpop.eup %1437  ;;  %v901_v47 = vmul.f32 %v1436_v46, %v898_v42  ;;  %vm906_vm8 = vweird.f32 %v1436_v46  ;;  %v2537_v42 = vld [vmem:[#allocation35_spill] sm:$0xff] }
 0x3fd   :  { %v916_v56 = vmul.f32 %v1438_v26, %v899_v43  ;;  %vm907_vm10 = vmor %vm905_vm9, %vm906_vm8  ;;  %vm921_vm12 = vweird.f32 %v1438_v26 }
 0x3fe   :  { %v902_v52 = vsub.f32 1.0, %v901_v47  ;;  %vm922_vm14 = vmor %vm920_vm13, %vm921_vm12 }
 0x3ff   :  { %v917_v30 = vsub.f32 1.0, %v916_v56 }
 0x400   :  { %v903_v58 = vmul.f32 %v1436_v46, %v902_v52 }
 0x401   :  { %v918_v63 = vmul.f32 %v1438_v26, %v917_v30  ;;  %v2538_v30 = vld [vmem:[#allocation36_spill] sm:$0xff] }
 0x402   :  { %v904_v60 = vadd.f32 %v1436_v46, %v903_v58 }
 0x403   :  { %v919_v49 = vadd.f32 %v1438_v26, %v918_v63 }
 0x404   :  { %v908_v1 = vsel %vm907_vm10, %v1436_v46, %v904_v60 }
 0x405   :  { %v913_v9 = vsel %vm910_vm11, %v912_v15, %v908_v1  ;;  %v923_v28 = vsel %vm922_vm14, %v1438_v26, %v919_v49  ;;  %v2539_v1 = vld [vmem:[#allocation37_spill] sm:$0xff] }
 0x406   :  { %v931_v57 = vmul.f32 %v930_v14, %v913_v9  ;;  %v928_v12 = vsel %vm925_vm15, %v927_v44, %v923_v28 }
 0x408   :  { %v932_v45 = vadd.f32 %v931_v57, %v2534_v41 }
 0x40a   :  { %1439 = vtanh.f32 %v932_v45 }
 0x410   :  { %v1440_v7 = vpop.eup %1439 }
 0x411   :  { %v934_v13 = vsub.f32 %v2329_v4, %v1440_v7 }
 0x413   :  { %v935_v27 = vmul.f32 %v934_v13, %v928_v12 }
 0x415   :  { %v2415_v38 = vadd.f32 %v1440_v7, %v935_v27 }
 0x417   :  { %956 = vmatmul.f32.vlgmr.msra.gmra.mxu1 %v2415_v38  ;;  %976 = vmatmul.f32.vlgmr.msra.gmra.mxu2 %v2415_v38 }
 0x418   :  { %996 = vmatmul.f32.vlgmr.msrb.gmra.mxu3 %v2415_v38  ;;  %1200 = vmatpush.msra.mxu1 %v2240_v17 }
 0x41a   :  { %1201 = vmatpush.msra.mxu1 %v2247_v10  ;;  %v2535_v10 = vld [vmem:[#allocation33_spill] sm:$0xff] }
 0x41c   :  { %1202 = vmatpush.msra.mxu1 %v2340_v35  ;;  %v2536_v35 = vld [vmem:[#allocation34_spill] sm:$0xff] }
 0x41e   :  { %1203 = vmatpush.msra.mxu1 %v2345_v32 }
 0x420   :  { %1204 = vmatpush.msra.mxu1 %v2350_v31 }
 0x422   :  { %1205 = vmatpush.msra.mxu1 %v2355_v51 }
 0x424   :  { %1206 = vmatpush.msra.mxu1 %v2360_v34 }
 0x426   :  { %1207 = vmatpush.msra.mxu1 %v2365_v36 }
 0x428   :  { %1208 = vmatpush.msra.mxu1 %v2370_v59 }
 0x42a   :  { %1209 = vmatpush.msra.mxu1 %v2375_v62 }
 0x42c   :  { %1210 = vmatpush.msra.mxu1 %v2380_v2 }
 0x42e   :  { %1211 = vmatpush.msra.mxu1 %v2385_v11 }
 0x430   :  { %1212 = vmatpush.msra.mxu1 %v2390_v16 }
 0x432   :  { %1213 = vmatpush.msra.mxu1 %v2395_v18 }
 0x434   :  { %1214 = vmatpush.msra.mxu1 %v2400_v19 }
 0x436   :  { %1215 = vmatpush.msra.mxu1 %v2405_v20 }
 0x494   :  { %v957_v17 = vpop.f32.mrf.mxu1 }
 0x495   :  { %v1000_v3 = vadd.f32 %v957_v17, %v2535_v10 }
 0x497   :  { %v1369_v8 = vmul.f32 -1.442695, %v1000_v3 }
 0x499   :  { %1441 = vpow2.f32 %v1369_v8 }
 0x49a   :  { %v977_v4 = vpop.f32.mrf.mxu2 }
 0x49b   :  { %v1001_v32 = vadd.f32 %v977_v4, %v2536_v35  ;;  %v997_v22 = vpop.f32.mrf.mxu3  ;;  %v2446_v35 = vld [vmem:[%s2472_s4] ss:$0 sm:$0xff] }
 0x49c   :  { %v1040_v37 = vadd.f32 %v2078_v48, %v997_v22 }
 0x49d   :  { %v1370_v31 = vmul.f32 -1.442695, %v1001_v32 }
 0x49f   :  { %v1442_v51 = vpop.eup %1441  ;;  %1443 = vpow2.f32 %v1370_v31 }
 0x4a0   :  { %v1008_v34 = vadd.f32 1.0, %v1442_v51 }
 0x4a2   :  { %1445 = vrcp.f32 %v1008_v34  ;;  %v1021_v16 = vand.u32 2147483648, %v1008_v34  ;;  %v1019_v19 = vand.u32 2147483647, %v1008_v34  ;;  %vm1015_vm1 = vweird.f32 %v1008_v34 }
 0x4a4   :  { %v1022_v6 = vor.u32 1.1754944e-38, %v1021_v16  ;;  %vm1020_vm3 = vcmp.eq.f32.partialorder %v1019_v19, 8.507059e+37 }
 0x4a5   :  { %v1444_v36 = vpop.eup %1443 }
 0x4a6   :  { %v1009_v59 = vadd.f32 1.0, %v1444_v36  ;;  %v2540_v36 = vld [vmem:[#allocation38_spill] sm:$0xff] }
 0x4a8   :  { %v1446_v62 = vpop.eup %1445  ;;  %1447 = vrcp.f32 %v1009_v59  ;;  %v1036_v26 = vand.u32 2147483648, %v1009_v59  ;;  %vm1030_vm5 = vweird.f32 %v1009_v59  ;;  %v1034_v47 = vand.u32 2147483647, %v1009_v59 }
 0x4a9   :  { %v1011_v2 = vmul.f32 %v1446_v62, %v1008_v34  ;;  %vm1016_vm0 = vweird.f32 %v1446_v62 }
 0x4aa   :  { %vm1017_vm2 = vmor %vm1015_vm1, %vm1016_vm0  ;;  %v1037_v56 = vor.u32 1.1754944e-38, %v1036_v26  ;;  %vm1035_vm7 = vcmp.eq.f32.partialorder %v1034_v47, 8.507059e+37  ;;  %v1277_v47 = vld [vmem:[#allocation8 + $0x48] sm:$0xff] }
 0x4ab   :  { %v1012_v11 = vsub.f32 1.0, %v1011_v2 }
 0x4ad   :  { %v1013_v18 = vmul.f32 %v1446_v62, %v1012_v11 }
 0x4ae   :  { %v1448_v20 = vpop.eup %1447 }
 0x4af   :  { %v1026_v23 = vmul.f32 %v1448_v20, %v1009_v59  ;;  %v1014_v50 = vadd.f32 %v1446_v62, %v1013_v18  ;;  %vm1031_vm4 = vweird.f32 %v1448_v20 }
 0x4b0   :  { %vm1032_vm6 = vmor %vm1030_vm5, %vm1031_vm4 }
 0x4b1   :  { %v1027_v21 = vsub.f32 1.0, %v1026_v23  ;;  %v1018_v33 = vsel %vm1017_vm2, %v1446_v62, %v1014_v50 }
 0x4b2   :  { %v1023_v39 = vsel %vm1020_vm3, %v1022_v6, %v1018_v33  ;;  %v1283_v6 = vld [vmem:[#allocation8 + $0x78] sm:$0xff]  ;;  %v1281_v33 = vld [vmem:[#allocation8 + $0x68] sm:$0xff] }
 0x4b3   :  { %v1041_v24 = vmul.f32 %v1040_v37, %v1023_v39  ;;  %v1028_v40 = vmul.f32 %v1448_v20, %v1027_v21  ;;  %1288 = vmatpush.msra.mxu2 %v1283_v6  ;;  %v1282_v21 = vld [vmem:[#allocation8 + $0x70] sm:$0xff]  ;;  %v2541_v37 = vld [vmem:[#allocation20_spill] sm:$0xff] }
 0x4b4   :  { %v268_v39 = vadd.f32 %v2136_v25, %v2541_v37  ;;  %v1274_v25 = vld [vmem:[#allocation8 + $0x30] sm:$0xff] }
 0x4b5   :  { %v1042_v43 = vadd.f32 %v1041_v24, %v2537_v42  ;;  %v1029_v46 = vadd.f32 %v1448_v20, %v1028_v40  ;;  %1289 = vmatpush.msra.mxu2 %v1282_v21  ;;  %v1280_v40 = vld [vmem:[#allocation8 + $0x60] sm:$0xff] }
 0x4b7   :  { %1449 = vtanh.f32 %v1042_v43  ;;  %v1033_v52 = vsel %vm1032_vm6, %v1448_v20, %v1029_v46  ;;  %1290 = vmatpush.msra.mxu2 %v1281_v33  ;;  %v1279_v43 = vld [vmem:[#allocation8 + $0x58] sm:$0xff]  ;;  %v1278_v46 = vld [vmem:[#allocation8 + $0x50] sm:$0xff] }
 0x4b8   :  { %v1038_v61 = vsel %vm1035_vm7, %v1037_v56, %v1033_v52  ;;  %v2542_v56 = vld [vmem:[#allocation39_spill] sm:$0xff] }
 0x4b9   :  { %1291 = vmatpush.msra.mxu2 %v1280_v40 }
 0x4bb   :  { %1292 = vmatpush.msra.mxu2 %v1279_v43 }
 0x4bd   :  { %v1450_v54 = vpop.eup %1449  ;;  %1293 = vmatpush.msra.mxu2 %v1278_v46 }
 0x4be   :  { %v1044_v58 = vsub.f32 %v2415_v38, %v1450_v54 }
 0x4bf   :  { %1294 = vmatpush.msra.mxu2 %v1277_v47 }
 0x4c0   :  { %v1045_v48 = vmul.f32 %v1044_v58, %v1038_v61  ;;  %v1275_v61 = vld [vmem:[#allocation8 + $0x38] sm:$0xff] }
 0x4c2   :  { %v1046_v55 = vadd.f32 %v1450_v54, %v1045_v48  ;;  %v1276_v54 = vld [vmem:[#allocation8 + $0x40] sm:$0xff] }
 0x4c3   :  { %1295 = vmatpush.msra.mxu2 %v1276_v54 }
 0x4c4   :  { %1066 = vmatmul.f32.vlgmr.msrb.gmra.mxu0 %v1046_v55  ;;  %1086 = vmatmul.f32.vlgmr.msrb.gmra.mxu1 %v1046_v55 }
 0x4c5   :  { %1106 = vmatmul.f32.vlgmr.msrb.gmra.mxu2 %v1046_v55 }
 0x4c6   :  { %1296 = vmatpush.msra.mxu2 %v1275_v61 }
 0x4c8   :  { %1297 = vmatpush.msra.mxu2 %v1274_v25 }
 0x541   :  { %v1067_v60 = vpop.f32.mrf.mxu0  ;;  %v1087_v15 = vpop.f32.mrf.mxu1 }
 0x542   :  { %v1110_v14 = vadd.f32 %v1067_v60, %v2538_v30  ;;  %v1111_v9 = vadd.f32 %v1087_v15, %v2539_v1  ;;  %v1272_v15 = vld [vmem:[#allocation8 + $0x20] sm:$0xff]  ;;  %v1271_v30 = vld [vmem:[#allocation8 + $0x18] sm:$0xff] }
 0x544   :  { %v1371_v57 = vmul.f32 -1.442695, %v1110_v14  ;;  %v1372_v63 = vmul.f32 -1.442695, %v1111_v9 }
 0x546   :  { %1451 = vpow2.f32 %v1371_v57  ;;  %v1270_v57 = vld [vmem:[#allocation8 + $0x10] sm:$0xff] }
 0x547   :  { %1453 = vpow2.f32 %v1372_v63  ;;  %v1269_v63 = vld [vmem:[#allocation8 + $0x8] sm:$0xff] }
 0x548   :  { %v1107_v17 = vpop.f32.mrf.mxu2 }
 0x549   :  { %v1150_v32 = vadd.f32 %v2446_v35, %v1107_v17 }
 0x54c   :  { %v1452_v41 = vpop.eup %1451 }
 0x54d   :  { %v1454_v45 = vpop.eup %1453  ;;  %v1118_v49 = vadd.f32 1.0, %v1452_v41  ;;  %v1268_v41 = vld [vmem:[#allocation8] sm:$0xff] }
 0x54e   :  { %v1119_v53 = vadd.f32 1.0, %v1454_v45 }
 0x54f   :  { %1455 = vrcp.f32 %v1118_v49  ;;  %v1131_v12 = vand.u32 2147483648, %v1118_v49  ;;  %v1129_v38 = vand.u32 2147483647, %v1118_v49  ;;  %vm1125_vm9 = vweird.f32 %v1118_v49 }
 0x550   :  { %1457 = vrcp.f32 %v1119_v53  ;;  %v1146_v2 = vand.u32 2147483648, %v1119_v53  ;;  %vm1140_vm13 = vweird.f32 %v1119_v53  ;;  %v1144_v11 = vand.u32 2147483647, %v1119_v53 }
 0x551   :  { %v1132_v8 = vor.u32 1.1754944e-38, %v1131_v12  ;;  %vm1130_vm11 = vcmp.eq.f32.partialorder %v1129_v38, 8.507059e+37 }
 0x552   :  { %v1147_v19 = vor.u32 1.1754944e-38, %v1146_v2  ;;  %vm1145_vm15 = vcmp.eq.f32.partialorder %v1144_v11, 8.507059e+37 }
 0x555   :  { %v1456_v5 = vpop.eup %1455 }
 0x556   :  { %v1458_v28 = vpop.eup %1457  ;;  %v1121_v7 = vmul.f32 %v1456_v5, %v1118_v49  ;;  %vm1126_vm8 = vweird.f32 %v1456_v5 }
 0x557   :  { %v1136_v13 = vmul.f32 %v1458_v28, %v1119_v53  ;;  %vm1127_vm10 = vmor %vm1125_vm9, %vm1126_vm8  ;;  %vm1141_vm12 = vweird.f32 %v1458_v28 }
 0x558   :  { %v1122_v44 = vsub.f32 1.0, %v1121_v7  ;;  %vm1142_vm14 = vmor %vm1140_vm13, %vm1141_vm12 }
 0x559   :  { %v1137_v3 = vsub.f32 1.0, %v1136_v13 }
 0x55a   :  { %v1123_v27 = vmul.f32 %v1456_v5, %v1122_v44 }
 0x55b   :  { %v1138_v34 = vmul.f32 %v1458_v28, %v1137_v3 }
 0x55c   :  { %v1124_v10 = vadd.f32 %v1456_v5, %v1123_v27 }
 0x55d   :  { %v1139_v62 = vadd.f32 %v1458_v28, %v1138_v34 }
 0x55e   :  { %v1128_v4 = vsel %vm1127_vm10, %v1456_v5, %v1124_v10 }
 0x55f   :  { %v1133_v31 = vsel %vm1130_vm11, %v1132_v8, %v1128_v4  ;;  %v1143_v16 = vsel %vm1142_vm14, %v1458_v28, %v1139_v62  ;;  %v309_v4 = vadd.f32 %v2138_v29, %v2027_v0  ;;  %v1390_v29 = vld [vmem:[%s2474_s6] ss:$0 sm:$0xff] }
 0x560   :  { %v1151_v51 = vmul.f32 %v1150_v32, %v1133_v31  ;;  %v1148_v22 = vsel %vm1145_vm15, %v1147_v19, %v1143_v16 }
 0x562   :  { %v1152_v59 = vadd.f32 %v1151_v51, %v2540_v36 }
 0x564   :  { %1459 = vtanh.f32 %v1152_v59 }
 0x56a   :  { %v1460_v18 = vpop.eup %1459 }
 0x56b   :  { %v1154_v20 = vsub.f32 %v1046_v55, %v1460_v18  ;;  %v1273_v55 = vld [vmem:[#allocation8 + $0x28] sm:$0xff] }
 0x56c   :  { %1298 = vmatpush.msra.mxu2 %v1273_v55 }
 0x56d   :  { %v1155_v23 = vmul.f32 %v1154_v20, %v1148_v22 }
 0x56e   :  { %1299 = vmatpush.msra.mxu2 %v1272_v15 }
 0x56f   :  { %v2450_v50 = vadd.f32 %v1460_v18, %v1155_v23 }
 0x570   :  { %1300 = vmatpush.msra.mxu2 %v1271_v30 }
 0x571   :  { %1176 = vmatmul.f32.vlgmr.msra.gmra.mxu3 %v2450_v50  ;;  %1196 = vmatmul.f32.vlgmr.msra.gmra.mxu0 %v2450_v50 }
 0x572   :  { %1216 = vmatmul.f32.vlgmr.msra.gmra.mxu1 %v2450_v50  ;;  %1301 = vmatpush.msra.mxu2 %v1270_v57 }
 0x574   :  { %1302 = vmatpush.msra.mxu2 %v1269_v63 }
 0x576   :  { %1303 = vmatpush.msra.mxu2 %v1268_v41 }
 0x5ee   :  { %v1197_v24 = vpop.f32.mrf.mxu0 }
 0x5ef   :  { %v1221_v42 = vadd.f32 %v1197_v24, %v268_v39  ;;  %v1217_v12 = vpop.f32.mrf.mxu1 }
 0x5f0   :  { %v1260_v10 = vadd.f32 %v2446_v35, %v1217_v12 }
 0x5f1   :  { %v1374_v26 = vmul.f32 -1.442695, %v1221_v42 }
 0x5f3   :  { %1461 = vpow2.f32 %v1374_v26 }
 0x5f4   :  { %v1177_v52 = vpop.f32.mrf.mxu3 }
 0x5f5   :  { %v1220_v58 = vadd.f32 %v1177_v52, %v2542_v56 }
 0x5f7   :  { %v1373_v48 = vmul.f32 -1.442695, %v1220_v58 }
 0x5f9   :  { %1463 = vpow2.f32 %v1373_v48  ;;  %v1462_v60 = vpop.eup %1461 }
 0x5fa   :  { %v1229_v1 = vadd.f32 1.0, %v1462_v60 }
 0x5fc   :  { %v1256_v36 = vand.u32 2147483648, %v1229_v1  ;;  %vm1250_vm5 = vweird.f32 %v1229_v1  ;;  %v1254_v59 = vand.u32 2147483647, %v1229_v1 }
 0x5fe   :  { %v1257_v11 = vor.u32 1.1754944e-38, %v1256_v36  ;;  %vm1255_vm7 = vcmp.eq.f32.partialorder %v1254_v59, 8.507059e+37 }
 0x5ff   :  { %v1464_v14 = vpop.eup %1463 }
 0x600   :  { %v1228_v9 = vadd.f32 1.0, %v1464_v14 }
 0x602   :  { %1465 = vrcp.f32 %v1228_v9  ;;  %v1241_v7 = vand.u32 2147483648, %v1228_v9  ;;  %v1239_v13 = vand.u32 2147483647, %v1228_v9  ;;  %vm1235_vm1 = vweird.f32 %v1228_v9 }
 0x603   :  { %1467 = vrcp.f32 %v1229_v1 }
 0x604   :  { %v1242_v17 = vor.u32 1.1754944e-38, %v1241_v7  ;;  %vm1240_vm3 = vcmp.eq.f32.partialorder %v1239_v13, 8.507059e+37 }
 0x608   :  { %v1466_v45 = vpop.eup %1465 }
 0x609   :  { %v1468_v49 = vpop.eup %1467  ;;  %v1231_v53 = vmul.f32 %v1466_v45, %v1228_v9  ;;  %vm1236_vm0 = vweird.f32 %v1466_v45 }
 0x60a   :  { %v1246_v28 = vmul.f32 %v1468_v49, %v1229_v1  ;;  %vm1237_vm2 = vmor %vm1235_vm1, %vm1236_vm0  ;;  %vm1251_vm4 = vweird.f32 %v1468_v49 }
 0x60b   :  { %v1232_v5 = vsub.f32 1.0, %v1231_v53  ;;  %vm1252_vm6 = vmor %vm1250_vm5, %vm1251_vm4 }
 0x60c   :  { %v1247_v38 = vsub.f32 1.0, %v1246_v28 }
 0x60d   :  { %v1233_v44 = vmul.f32 %v1466_v45, %v1232_v5 }
 0x60e   :  { %v1248_v31 = vmul.f32 %v1468_v49, %v1247_v38 }
 0x60f   :  { %v1234_v27 = vadd.f32 %v1466_v45, %v1233_v44 }
 0x610   :  { %v1249_v34 = vadd.f32 %v1468_v49, %v1248_v31 }
 0x611   :  { %v1238_v3 = vsel %vm1237_vm2, %v1466_v45, %v1234_v27 }
 0x612   :  { %v1243_v8 = vsel %vm1240_vm3, %v1242_v17, %v1238_v3  ;;  %v1253_v62 = vsel %vm1252_vm6, %v1468_v49, %v1249_v34 }
 0x613   :  { %v1261_v32 = vmul.f32 %v1260_v10, %v1243_v8  ;;  %v1258_v16 = vsel %vm1255_vm7, %v1257_v11, %v1253_v62 }
 0x615   :  { %v1262_v51 = vadd.f32 %v1261_v32, %v309_v4 }
 0x617   :  { %1469 = vtanh.f32 %v1262_v51 }
 0x61d   :  { %v1470_v2 = vpop.eup %1469 }
 0x61e   :  { %v1264_v35 = vsub.f32 %v2450_v50, %v1470_v2 }
 0x620   :  { %v1265_v18 = vmul.f32 %v1264_v35, %v1258_v16 }
 0x622   :  { %v1266_v19 = vadd.f32 %v1470_v2, %v1265_v18 }
 0x624   :  { %v1267_v0 = vmax.f32 %v1266_v19, 0.0 }
 0x626   :  { %1304 = vmatmul.f32.vlgmr.msra.gmra.mxu2 %v1267_v0 }
 0x6a9   :  { %v1305_v20 = vpop.f32.mrf.mxu2 }
 0x6aa   :  { %v1306_v22 = vadd.f32 %v1390_v29, %v1305_v20 }
 0x6ac   :  { %1308 = vst [vmem:[#allocation9] sm:$0xff] %v1306_v22 }
 0x6ad   :  { %1319 = dma.vmem_to_hbm [thread:$0]  %s1315_s3, 128, %s1317_s18, [#allocation5]  }
 0x6ae   :  { %1620 = dma.done.wait [#allocation5], 128  }
 0x6af   :  { %1621 = vsyncadd [#allocation5], 4294967168 }
 0x6b0   :  { %1324 = vsyncpa [#allocation4], 1 }
 0x6b1   :  { %1325 = vsyncpa [#allocation7], 1 }
 0x6b2   :  { %1326 = vsyncpa [#allocation5], 1 }

</bundles_post_ra>
